<compile_context>
chip_gen: v6e
topology: v6e:2x2x1
jax: 0.10.0
libtpu: 0.0.40
codegen_flags: <defaults>
</compile_context>

<pallas_src>
import numpy as np
import jax
import jax.numpy as jnp
from jax.experimental import pallas as pl
from jax.experimental.pallas import tpu as pltpu


# ConvTranspose2d(k=4, s=2, p=1): output parity p, tap a reads the zero-padded
# input at offset p + a and uses kernel index _KMAP[p][a]  (oy = 2*iy - 1 + ky).
_KMAP = ((3, 1), (2, 0))


def _fused_predictor_kernel(xcat_ref, w_ref, b_ref, o_ref, ppad_ref):
    # xcat_ref: [1, H+1, W+1, 4*D] bf16  im2col'd zero-padded input (4 taps in K)
    # w_ref   : [4, 4*D, O]        bf16  per-parity tap-stacked deconv weights
    # b_ref   : [1, O]             f32   bias (zero-padded to O=128 lanes)
    # o_ref   : [1, 4, H, W, 4*O]  f32   o_ref[0,t,i,j,s*O:(s+1)*O] = hires[4i+t,4j+s,:]
    # ppad_ref: [2, 2, H, W+2, O]  f32   scratch: P blocks + replicate-clamp columns
    _, Hp1, Wp1, D4 = xcat_ref.shape
    H, W = Hp1 - 1, Wp1 - 1
    O = b_ref.shape[-1]
    bias = b_ref[...]                                        # (1, O) f32

    # ---- stage 1: fused-tap transposed conv, one K=4*D matmul per parity ----
    # P[py][px][i, j, :] == lowres[2i+py, 2j+px, :]
    P = [[None, None], [None, None]]
    for py in range(2):
        for px in range(2):
            lhs = xcat_ref[0, py:py + H, px:px + W, :]       # (H, W, 4D) bf16
            acc = jnp.dot(lhs.reshape(H * W, D4), w_ref[2 * py + px],
                          preferred_element_type=jnp.float32)
            P[py][px] = (acc + bias).reshape(H, W, O)

    # ---- stash P blocks with replicate-clamp columns so the column-shifted
    #      bilinear taps become plain (unaligned) VMEM loads ----
    for py in range(2):
        ppad_ref[py, 0, :, 1:W + 1, :] = P[py][0]
        ppad_ref[py, 1, :, 1:W + 1, :] = P[py][1]
        ppad_ref[py, 1, :, 0:1, :] = P[py][0][:, 0:1, :]            # left clamp
        ppad_ref[py, 0, :, W + 1:W + 2, :] = P[py][1][:, W - 1:W, :]  # right clamp

    # ---- stage 2a: column pass of separable 2x bilinear (align_corners=False)
    # C[py][s][i, j, :] == col-interp(lowres)[2i+py, 4j+s, :]
    C = [[None] * 4 for _ in range(2)]
    for py in range(2):
        a0, a1 = P[py][0], P[py][1]
        a1_up = ppad_ref[py, 1, :, 0:W, :]        # [:, j] = lowres col 2j-1 (clamped)
        a0_dn = ppad_ref[py, 0, :, 2:W + 2, :]    # [:, j] = lowres col 2j+2 (clamped)
        C[py][0] = 0.25 * a1_up + 0.75 * a0
        C[py][1] = 0.75 * a0 + 0.25 * a1
        C[py][2] = 0.25 * a0 + 0.75 * a1
        C[py][3] = 0.75 * a1 + 0.25 * a0_dn

    # ---- stage 2b: row pass; dense 128-lane-aligned stores per (t, s) block ----
    for s in range(4):
        b0, b1 = C[0][s], C[1][s]
        b1_up = jnp.concatenate([b0[0:1], b1[0:H - 1]], axis=0)    # row i-1 (clamped)
        b0_dn = jnp.concatenate([b0[1:H], b1[H - 1:H]], axis=0)    # row i+1 (clamped)
        lo, hi = s * O, (s + 1) * O
        o_ref[0, 0, :, :, lo:hi] = 0.25 * b1_up + 0.75 * b0
        o_ref[0, 1, :, :, lo:hi] = 0.75 * b0 + 0.25 * b1
        o_ref[0, 2, :, :, lo:hi] = 0.25 * b0 + 0.75 * b1
        o_ref[0, 3, :, :, lo:hi] = 0.75 * b1 + 0.25 * b0_dn


# ----------------------------------------------------------------------------
# Wrapper (NCHW in / NCHW out, like the PyTorch module)
# ----------------------------------------------------------------------------
def densepose_chart_predictor_forward(x_nchw, w_all, b_all,
                                      n_segm_chan=2, dim_out_patches=25):
    N, D, H, W = x_nchw.shape
    O = w_all.shape[1]
    Opad = ((O + 127) // 128) * 128

    # NHWC, zero-pad by 1 (k=4,s=2,p=1 halo), im2col the four 2x2 taps into the
    # channel axis -> one K=4*D matmul per output parity inside the kernel.
    x = jnp.transpose(x_nchw, (0, 2, 3, 1)).astype(jnp.float32)
    xpad = jnp.pad(x, ((0, 0), (1, 1), (1, 1), (0, 0)))
    xcat = jnp.concatenate(
        [xpad[:, 0:H + 1, 0:W + 1, :], xpad[:, 0:H + 1, 1:W + 2, :],
         xpad[:, 1:H + 2, 0:W + 1, :], xpad[:, 1:H + 2, 1:W + 2, :]],
        axis=-1).astype(jnp.bfloat16)                              # (N, H+1, W+1, 4D)

    # Per-parity tap-stacked weights, zero-padded to 128 output lanes, bf16.
    wf = jnp.pad(w_all.astype(jnp.float32),
                 ((0, 0), (0, Opad - O), (0, 0), (0, 0)))          # (D, Opad, 4, 4)
    wstk = []
    for py in range(2):
        for px in range(2):
            taps = [wf[:, :, _KMAP[py][a], _KMAP[px][b]]
                    for a in range(2) for b in range(2)]           # 4 x (D, Opad)
            wstk.append(jnp.concatenate(taps, axis=0))             # (4D, Opad)
    w_packed = jnp.stack(wstk, axis=0).astype(jnp.bfloat16)        # (4, 4D, Opad)
    b_packed = jnp.pad(b_all.astype(jnp.float32), (0, Opad - O)).reshape(1, Opad)

    out = pl.pallas_call(
        _fused_predictor_kernel,
        out_shape=jax.ShapeDtypeStruct((N, 4, H, W, 4 * Opad), jnp.float32),
        grid=(N,),
        in_specs=[
            pl.BlockSpec((1, H + 1, W + 1, 4 * D), lambda n: (n, 0, 0, 0)),
            pl.BlockSpec((4, 4 * D, Opad), lambda n: (0, 0, 0)),
            pl.BlockSpec((1, Opad), lambda n: (0, 0)),
        ],
        out_specs=pl.BlockSpec((1, 4, H, W, 4 * Opad),
                               lambda n: (n, 0, 0, 0, 0)),
        scratch_shapes=[pltpu.VMEM((2, 2, H, W + 2, Opad), jnp.float32)],
        compiler_params=pltpu.CompilerParams(
            dimension_semantics=("parallel",)),
    )(xcat, w_packed, b_packed)

    # out[n, t, i, j, s*Opad + o] == hires_nhwc[n, 4i+t, 4j+s, o].  The reshape
    # is row-major-free; the single 6-D transpose per head is the (mandatory)
    # NCHW-ification fused with the parity interleave and channel slicing.
    out6 = out.reshape(N, 4, H, W, 4, Opad)

    def _head(lo, hi):
        h = jnp.transpose(out6[..., lo:hi], (0, 5, 2, 1, 3, 4))    # (N,C,H,t,W,s)
        return h.reshape(N, hi - lo, 4 * H, 4 * W)

    k, c = n_segm_chan, dim_out_patches
    return {
        "coarse_segm": _head(0, k),
        "fine_segm":   _head(k, k + c),
        "u":           _head(k + c, k + 2 * c),
        "v":           _head(k + 2 * c, k + 3 * c),
    }


# ----------------------------------------------------------------------------
# NumPy references (independent, naive) for correctness checking
# ----------------------------------------------------------------------------
def _ref_deconv(x, w, b):  # x [N,D,H,W], w [D,O,4,4], b [O]
    N, D, H, W = x.shape
    O = w.shape[1]
    out = np.zeros((N, O, 2 * H, 2 * W), np.float64)
    for iy in range(H):
        for ix in range(W):
            v = x[:, :, iy, ix]
            for ky in range(4):
                oy = 2 * iy - 1 + ky
                if not (0 <= oy < 2 * H):
                    continue
                for kx in range(4):
                    ox = 2 * ix - 1 + kx
                    if not (0 <= ox < 2 * W):
                        continue
                    out[:, :, oy, ox] += v @ w[:, :, ky, kx]
    return out + b[None, :, None, None]


def _ref_bilinear2x(x):  # x [N,C,H,W], scale 2, align_corners=False
    N, C, H, W = x.shape
    out = np.zeros((N, C, 2 * H, 2 * W), np.float64)

    def src(d, size):
        s = max(0.5 * (d + 0.5) - 0.5, 0.0)
        lo = min(int(np.floor(s)), size - 1)
        hi = min(lo + 1, size - 1)
        return lo, hi, s - lo

    for oy in range(2 * H):
        ly, hy, fy = src(oy, H)
        for ox in range(2 * W):
            lx, hx, fx = src(ox, W)
            out[:, :, oy, ox] = ((1 - fy) * (1 - fx) * x[:, :, ly, lx]
                                 + (1 - fy) * fx * x[:, :, ly, hx]
                                 + fy * (1 - fx) * x[:, :, hy, lx]
                                 + fy * fx * x[:, :, hy, hx])
    return out


if __name__ == "__main__":
    # Small deterministic setup: N=2 instances, D=8 head channels, 8x8 spatial.
    N, D, H, W = 2, 8, 8, 8
    n_segm_chan, dim_out_patches = 2, 25           # K=2 coarse, C=25 fine channels
    Os = [n_segm_chan, dim_out_patches, dim_out_patches, dim_out_patches]

    keys = jax.random.split(jax.random.PRNGKey(0), 1 + 2 * len(Os))
    x = jax.random.normal(keys[0], (N, D, H, W), jnp.float32)
    ws = [jax.random.normal(keys[1 + i], (D, o, 4, 4), jnp.float32) * 0.05
          for i, o in enumerate(Os)]
    bs = [jax.random.normal(keys[5 + i], (o,), jnp.float32) * 0.05
          for i, o in enumerate(Os)]
    w_all = jnp.concatenate(ws, axis=1)            # [D, 77, 4, 4]
    b_all = jnp.concatenate(bs, axis=0)            # [77]

    out = jax.jit(densepose_chart_predictor_forward)(x, w_all, b_all)
    out = jax.block_until_ready(out)

    # Reference check against naive NumPy implementation (tolerance loosened
    # for bf16 MXU operands with f32 accumulation).
    lowres_ref = _ref_deconv(np.asarray(x), np.asarray(w_all), np.asarray(b_all))
    hires_ref = _ref_bilinear2x(lowres_ref)
    refs = {
        "coarse_segm": hires_ref[:, :2],
        "fine_segm":   hires_ref[:, 2:27],
        "u":           hires_ref[:, 27:52],
        "v":           hires_ref[:, 52:77],
    }
    for name in ("coarse_segm", "fine_segm", "u", "v"):
        got = np.asarray(out[name])
        assert got.shape == refs[name].shape, (name, got.shape, refs[name].shape)
        np.testing.assert_allclose(got, refs[name], rtol=3e-2, atol=3e-2)

    print("KERNEL_OK")
</pallas_src>

<mosaic_0001>
module attributes {stable_mosaic.version = 11 : i64} {
  func.func @_fused_predictor_kernel(%arg0: i32, %arg1: memref<1x9x9x32xbf16, #tpu.memory_space<vmem>>, %arg2: memref<4x32x128xbf16, #tpu.memory_space<vmem>>, %arg3: memref<1x128xf32, #tpu.memory_space<vmem>>, %arg4: memref<1x4x8x8x512xf32, #tpu.memory_space<vmem>>, %arg5: memref<2x2x8x10x128xf32, #tpu.memory_space<vmem>>) attributes {dimension_semantics = [#tpu.dimension_semantics<parallel>], iteration_bounds = array<i64: 2>, scalar_prefetch = 0 : i64, scratch_operands = 1 : i64, tpu.core_type = #tpu.core_type<tc>, window_params = [{transform_indices = @transform_0, window_bounds = array<i64: 1, 9, 9, 32>}, {pipeline_mode = #tpu.pipeline_mode<synchronous>, transform_indices = @transform_1, window_bounds = array<i64: 4, 32, 128>}, {pipeline_mode = #tpu.pipeline_mode<synchronous>, transform_indices = @transform_2, window_bounds = array<i64: 1, 128>}, {transform_indices = @transform_3, window_bounds = array<i64: 1, 4, 8, 8, 512>}]} {
    %c0 = arith.constant 0 : index
    %c0_0 = arith.constant 0 : index
    %0 = vector.load %arg3[%c0, %c0_0] : memref<1x128xf32, #tpu.memory_space<vmem>>, vector<1x128xf32>
    %c0_1 = arith.constant 0 : index
    %c0_2 = arith.constant 0 : index
    %c0_3 = arith.constant 0 : index
    %c0_4 = arith.constant 0 : index
    %1 = vector.load %arg1[%c0_1, %c0_2, %c0_3, %c0_4] : memref<1x9x9x32xbf16, #tpu.memory_space<vmem>>, vector<1x8x8x32xbf16>
    %2 = vector.shape_cast %1 : vector<1x8x8x32xbf16> to vector<8x8x32xbf16>
    %3 = vector.shape_cast %2 : vector<8x8x32xbf16> to vector<64x32xbf16>
    %c0_5 = arith.constant 0 : index
    %c0_6 = arith.constant 0 : index
    %c0_7 = arith.constant 0 : index
    %4 = vector.load %arg2[%c0_5, %c0_6, %c0_7] : memref<4x32x128xbf16, #tpu.memory_space<vmem>>, vector<1x32x128xbf16>
    %5 = vector.shape_cast %4 : vector<1x32x128xbf16> to vector<32x128xbf16>
    %cst = arith.constant dense<0.000000e+00> : vector<64x128xf32>
    %6 = tpu.matmul %3, %5, %cst {dimension_numbers = #tpu.dot_dimension_numbers<[1], [0], [0], [1], [0, 0, 1, 1], [], []>} : vector<64x32xbf16>, vector<32x128xbf16>, vector<64x128xf32> -> vector<64x128xf32>
    %7 = vector.broadcast %0 : vector<1x128xf32> to vector<64x128xf32>
    %8 = arith.addf %6, %7 : vector<64x128xf32>
    %9 = vector.shape_cast %8 : vector<64x128xf32> to vector<8x8x128xf32>
    %c0_8 = arith.constant 0 : index
    %c0_9 = arith.constant 0 : index
    %c1 = arith.constant 1 : index
    %c0_10 = arith.constant 0 : index
    %10 = vector.load %arg1[%c0_8, %c0_9, %c1, %c0_10] : memref<1x9x9x32xbf16, #tpu.memory_space<vmem>>, vector<1x8x8x32xbf16>
    %11 = vector.shape_cast %10 : vector<1x8x8x32xbf16> to vector<8x8x32xbf16>
    %12 = vector.shape_cast %11 : vector<8x8x32xbf16> to vector<64x32xbf16>
    %c1_11 = arith.constant 1 : index
    %c0_12 = arith.constant 0 : index
    %c0_13 = arith.constant 0 : index
    %13 = vector.load %arg2[%c1_11, %c0_12, %c0_13] : memref<4x32x128xbf16, #tpu.memory_space<vmem>>, vector<1x32x128xbf16>
    %14 = vector.shape_cast %13 : vector<1x32x128xbf16> to vector<32x128xbf16>
    %cst_14 = arith.constant dense<0.000000e+00> : vector<64x128xf32>
    %15 = tpu.matmul %12, %14, %cst_14 {dimension_numbers = #tpu.dot_dimension_numbers<[1], [0], [0], [1], [0, 0, 1, 1], [], []>} : vector<64x32xbf16>, vector<32x128xbf16>, vector<64x128xf32> -> vector<64x128xf32>
    %16 = vector.broadcast %0 : vector<1x128xf32> to vector<64x128xf32>
    %17 = arith.addf %15, %16 : vector<64x128xf32>
    %18 = vector.shape_cast %17 : vector<64x128xf32> to vector<8x8x128xf32>
    %c0_15 = arith.constant 0 : index
    %c1_16 = arith.constant 1 : index
    %c0_17 = arith.constant 0 : index
    %c0_18 = arith.constant 0 : index
    %19 = vector.load %arg1[%c0_15, %c1_16, %c0_17, %c0_18] : memref<1x9x9x32xbf16, #tpu.memory_space<vmem>>, vector<1x8x8x32xbf16>
    %20 = vector.shape_cast %19 : vector<1x8x8x32xbf16> to vector<8x8x32xbf16>
    %21 = vector.shape_cast %20 : vector<8x8x32xbf16> to vector<64x32xbf16>
    %c2 = arith.constant 2 : index
    %c0_19 = arith.constant 0 : index
    %c0_20 = arith.constant 0 : index
    %22 = vector.load %arg2[%c2, %c0_19, %c0_20] : memref<4x32x128xbf16, #tpu.memory_space<vmem>>, vector<1x32x128xbf16>
    %23 = vector.shape_cast %22 : vector<1x32x128xbf16> to vector<32x128xbf16>
    %cst_21 = arith.constant dense<0.000000e+00> : vector<64x128xf32>
    %24 = tpu.matmul %21, %23, %cst_21 {dimension_numbers = #tpu.dot_dimension_numbers<[1], [0], [0], [1], [0, 0, 1, 1], [], []>} : vector<64x32xbf16>, vector<32x128xbf16>, vector<64x128xf32> -> vector<64x128xf32>
    %25 = vector.broadcast %0 : vector<1x128xf32> to vector<64x128xf32>
    %26 = arith.addf %24, %25 : vector<64x128xf32>
    %27 = vector.shape_cast %26 : vector<64x128xf32> to vector<8x8x128xf32>
    %c0_22 = arith.constant 0 : index
    %c1_23 = arith.constant 1 : index
    %c1_24 = arith.constant 1 : index
    %c0_25 = arith.constant 0 : index
    %28 = vector.load %arg1[%c0_22, %c1_23, %c1_24, %c0_25] : memref<1x9x9x32xbf16, #tpu.memory_space<vmem>>, vector<1x8x8x32xbf16>
    %29 = vector.shape_cast %28 : vector<1x8x8x32xbf16> to vector<8x8x32xbf16>
    %30 = vector.shape_cast %29 : vector<8x8x32xbf16> to vector<64x32xbf16>
    %c3 = arith.constant 3 : index
    %c0_26 = arith.constant 0 : index
    %c0_27 = arith.constant 0 : index
    %31 = vector.load %arg2[%c3, %c0_26, %c0_27] : memref<4x32x128xbf16, #tpu.memory_space<vmem>>, vector<1x32x128xbf16>
    %32 = vector.shape_cast %31 : vector<1x32x128xbf16> to vector<32x128xbf16>
    %cst_28 = arith.constant dense<0.000000e+00> : vector<64x128xf32>
    %33 = tpu.matmul %30, %32, %cst_28 {dimension_numbers = #tpu.dot_dimension_numbers<[1], [0], [0], [1], [0, 0, 1, 1], [], []>} : vector<64x32xbf16>, vector<32x128xbf16>, vector<64x128xf32> -> vector<64x128xf32>
    %34 = vector.broadcast %0 : vector<1x128xf32> to vector<64x128xf32>
    %35 = arith.addf %33, %34 : vector<64x128xf32>
    %36 = vector.shape_cast %35 : vector<64x128xf32> to vector<8x8x128xf32>
    %c0_29 = arith.constant 0 : index
    %c0_30 = arith.constant 0 : index
    %c0_31 = arith.constant 0 : index
    %c1_32 = arith.constant 1 : index
    %c0_33 = arith.constant 0 : index
    %37 = vector.load %arg5[%c0_29, %c0_30, %c0_31, %c1_32, %c0_33] : memref<2x2x8x10x128xf32, #tpu.memory_space<vmem>>, vector<1x1x8x8x128xf32>
    %38 = vector.shape_cast %37 : vector<1x1x8x8x128xf32> to vector<8x8x128xf32>
    %39 = vector.shape_cast %9 : vector<8x8x128xf32> to vector<1x1x8x8x128xf32>
    tpu.vector_store %arg5[%c0_29, %c0_30, %c0_31, %c1_32, %c0_33], %39 {strides = array<i32>} : memref<2x2x8x10x128xf32, #tpu.memory_space<vmem>>, vector<1x1x8x8x128xf32>,
    %c0_34 = arith.constant 0 : index
    %c1_35 = arith.constant 1 : index
    %c0_36 = arith.constant 0 : index
    %c1_37 = arith.constant 1 : index
    %c0_38 = arith.constant 0 : index
    %40 = vector.load %arg5[%c0_34, %c1_35, %c0_36, %c1_37, %c0_38] : memref<2x2x8x10x128xf32, #tpu.memory_space<vmem>>, vector<1x1x8x8x128xf32>
    %41 = vector.shape_cast %40 : vector<1x1x8x8x128xf32> to vector<8x8x128xf32>
    %42 = vector.shape_cast %18 : vector<8x8x128xf32> to vector<1x1x8x8x128xf32>
    tpu.vector_store %arg5[%c0_34, %c1_35, %c0_36, %c1_37, %c0_38], %42 {strides = array<i32>} : memref<2x2x8x10x128xf32, #tpu.memory_space<vmem>>, vector<1x1x8x8x128xf32>,
    %43 = vector.extract_strided_slice %9 {offsets = [0, 0, 0], sizes = [8, 1, 128], strides = [1, 1, 1]} : vector<8x8x128xf32> to vector<8x1x128xf32>
    %c0_39 = arith.constant 0 : index
    %c1_40 = arith.constant 1 : index
    %c0_41 = arith.constant 0 : index
    %c0_42 = arith.constant 0 : index
    %c0_43 = arith.constant 0 : index
    %44 = vector.load %arg5[%c0_39, %c1_40, %c0_41, %c0_42, %c0_43] : memref<2x2x8x10x128xf32, #tpu.memory_space<vmem>>, vector<1x1x8x1x128xf32>
    %45 = vector.shape_cast %44 : vector<1x1x8x1x128xf32> to vector<8x1x128xf32>
    %46 = vector.shape_cast %43 : vector<8x1x128xf32> to vector<1x1x8x1x128xf32>
    tpu.vector_store %arg5[%c0_39, %c1_40, %c0_41, %c0_42, %c0_43], %46 {strides = array<i32>} : memref<2x2x8x10x128xf32, #tpu.memory_space<vmem>>, vector<1x1x8x1x128xf32>,
    %47 = vector.extract_strided_slice %18 {offsets = [0, 7, 0], sizes = [8, 1, 128], strides = [1, 1, 1]} : vector<8x8x128xf32> to vector<8x1x128xf32>
    %c0_44 = arith.constant 0 : index
    %c0_45 = arith.constant 0 : index
    %c0_46 = arith.constant 0 : index
    %c9 = arith.constant 9 : index
    %c0_47 = arith.constant 0 : index
    %48 = vector.load %arg5[%c0_44, %c0_45, %c0_46, %c9, %c0_47] : memref<2x2x8x10x128xf32, #tpu.memory_space<vmem>>, vector<1x1x8x1x128xf32>
    %49 = vector.shape_cast %48 : vector<1x1x8x1x128xf32> to vector<8x1x128xf32>
    %50 = vector.shape_cast %47 : vector<8x1x128xf32> to vector<1x1x8x1x128xf32>
    tpu.vector_store %arg5[%c0_44, %c0_45, %c0_46, %c9, %c0_47], %50 {strides = array<i32>} : memref<2x2x8x10x128xf32, #tpu.memory_space<vmem>>, vector<1x1x8x1x128xf32>,
    %c1_48 = arith.constant 1 : index
    %c0_49 = arith.constant 0 : index
    %c0_50 = arith.constant 0 : index
    %c1_51 = arith.constant 1 : index
    %c0_52 = arith.constant 0 : index
    %51 = vector.load %arg5[%c1_48, %c0_49, %c0_50, %c1_51, %c0_52] : memref<2x2x8x10x128xf32, #tpu.memory_space<vmem>>, vector<1x1x8x8x128xf32>
    %52 = vector.shape_cast %51 : vector<1x1x8x8x128xf32> to vector<8x8x128xf32>
    %53 = vector.shape_cast %27 : vector<8x8x128xf32> to vector<1x1x8x8x128xf32>
    tpu.vector_store %arg5[%c1_48, %c0_49, %c0_50, %c1_51, %c0_52], %53 {strides = array<i32>} : memref<2x2x8x10x128xf32, #tpu.memory_space<vmem>>, vector<1x1x8x8x128xf32>,
    %c1_53 = arith.constant 1 : index
    %c1_54 = arith.constant 1 : index
    %c0_55 = arith.constant 0 : index
    %c1_56 = arith.constant 1 : index
    %c0_57 = arith.constant 0 : index
    %54 = vector.load %arg5[%c1_53, %c1_54, %c0_55, %c1_56, %c0_57] : memref<2x2x8x10x128xf32, #tpu.memory_space<vmem>>, vector<1x1x8x8x128xf32>
    %55 = vector.shape_cast %54 : vector<1x1x8x8x128xf32> to vector<8x8x128xf32>
    %56 = vector.shape_cast %36 : vector<8x8x128xf32> to vector<1x1x8x8x128xf32>
    tpu.vector_store %arg5[%c1_53, %c1_54, %c0_55, %c1_56, %c0_57], %56 {strides = array<i32>} : memref<2x2x8x10x128xf32, #tpu.memory_space<vmem>>, vector<1x1x8x8x128xf32>,
    %57 = vector.extract_strided_slice %27 {offsets = [0, 0, 0], sizes = [8, 1, 128], strides = [1, 1, 1]} : vector<8x8x128xf32> to vector<8x1x128xf32>
    %c1_58 = arith.constant 1 : index
    %c1_59 = arith.constant 1 : index
    %c0_60 = arith.constant 0 : index
    %c0_61 = arith.constant 0 : index
    %c0_62 = arith.constant 0 : index
    %58 = vector.load %arg5[%c1_58, %c1_59, %c0_60, %c0_61, %c0_62] : memref<2x2x8x10x128xf32, #tpu.memory_space<vmem>>, vector<1x1x8x1x128xf32>
    %59 = vector.shape_cast %58 : vector<1x1x8x1x128xf32> to vector<8x1x128xf32>
    %60 = vector.shape_cast %57 : vector<8x1x128xf32> to vector<1x1x8x1x128xf32>
    tpu.vector_store %arg5[%c1_58, %c1_59, %c0_60, %c0_61, %c0_62], %60 {strides = array<i32>} : memref<2x2x8x10x128xf32, #tpu.memory_space<vmem>>, vector<1x1x8x1x128xf32>,
    %61 = vector.extract_strided_slice %36 {offsets = [0, 7, 0], sizes = [8, 1, 128], strides = [1, 1, 1]} : vector<8x8x128xf32> to vector<8x1x128xf32>
    %c1_63 = arith.constant 1 : index
    %c0_64 = arith.constant 0 : index
    %c0_65 = arith.constant 0 : index
    %c9_66 = arith.constant 9 : index
    %c0_67 = arith.constant 0 : index
    %62 = vector.load %arg5[%c1_63, %c0_64, %c0_65, %c9_66, %c0_67] : memref<2x2x8x10x128xf32, #tpu.memory_space<vmem>>, vector<1x1x8x1x128xf32>
    %63 = vector.shape_cast %62 : vector<1x1x8x1x128xf32> to vector<8x1x128xf32>
    %64 = vector.shape_cast %61 : vector<8x1x128xf32> to vector<1x1x8x1x128xf32>
    tpu.vector_store %arg5[%c1_63, %c0_64, %c0_65, %c9_66, %c0_67], %64 {strides = array<i32>} : memref<2x2x8x10x128xf32, #tpu.memory_space<vmem>>, vector<1x1x8x1x128xf32>,
    %c0_68 = arith.constant 0 : index
    %c1_69 = arith.constant 1 : index
    %c0_70 = arith.constant 0 : index
    %c0_71 = arith.constant 0 : index
    %c0_72 = arith.constant 0 : index
    %65 = vector.load %arg5[%c0_68, %c1_69, %c0_70, %c0_71, %c0_72] : memref<2x2x8x10x128xf32, #tpu.memory_space<vmem>>, vector<1x1x8x8x128xf32>
    %66 = vector.shape_cast %65 : vector<1x1x8x8x128xf32> to vector<8x8x128xf32>
    %c0_73 = arith.constant 0 : index
    %c0_74 = arith.constant 0 : index
    %c0_75 = arith.constant 0 : index
    %c2_76 = arith.constant 2 : index
    %c0_77 = arith.constant 0 : index
    %67 = vector.load %arg5[%c0_73, %c0_74, %c0_75, %c2_76, %c0_77] : memref<2x2x8x10x128xf32, #tpu.memory_space<vmem>>, vector<1x1x8x8x128xf32>
    %68 = vector.shape_cast %67 : vector<1x1x8x8x128xf32> to vector<8x8x128xf32>
    %cst_78 = arith.constant 2.500000e-01 : f32
    %69 = vector.broadcast %cst_78 : f32 to vector<8x8x128xf32>
    %70 = arith.mulf %69, %66 : vector<8x8x128xf32>
    %cst_79 = arith.constant 7.500000e-01 : f32
    %71 = vector.broadcast %cst_79 : f32 to vector<8x8x128xf32>
    %72 = arith.mulf %71, %9 : vector<8x8x128xf32>
    %73 = arith.addf %70, %72 : vector<8x8x128xf32>
    %cst_80 = arith.constant 7.500000e-01 : f32
    %74 = vector.broadcast %cst_80 : f32 to vector<8x8x128xf32>
    %75 = arith.mulf %74, %9 : vector<8x8x128xf32>
    %cst_81 = arith.constant 2.500000e-01 : f32
    %76 = vector.broadcast %cst_81 : f32 to vector<8x8x128xf32>
    %77 = arith.mulf %76, %18 : vector<8x8x128xf32>
    %78 = arith.addf %75, %77 : vector<8x8x128xf32>
    %cst_82 = arith.constant 2.500000e-01 : f32
    %79 = vector.broadcast %cst_82 : f32 to vector<8x8x128xf32>
    %80 = arith.mulf %79, %9 : vector<8x8x128xf32>
    %cst_83 = arith.constant 7.500000e-01 : f32
    %81 = vector.broadcast %cst_83 : f32 to vector<8x8x128xf32>
    %82 = arith.mulf %81, %18 : vector<8x8x128xf32>
    %83 = arith.addf %80, %82 : vector<8x8x128xf32>
    %cst_84 = arith.constant 7.500000e-01 : f32
    %84 = vector.broadcast %cst_84 : f32 to vector<8x8x128xf32>
    %85 = arith.mulf %84, %18 : vector<8x8x128xf32>
    %cst_85 = arith.constant 2.500000e-01 : f32
    %86 = vector.broadcast %cst_85 : f32 to vector<8x8x128xf32>
    %87 = arith.mulf %86, %68 : vector<8x8x128xf32>
    %88 = arith.addf %85, %87 : vector<8x8x128xf32>
    %c1_86 = arith.constant 1 : index
    %c1_87 = arith.constant 1 : index
    %c0_88 = arith.constant 0 : index
    %c0_89 = arith.constant 0 : index
    %c0_90 = arith.constant 0 : index
    %89 = vector.load %arg5[%c1_86, %c1_87, %c0_88, %c0_89, %c0_90] : memref<2x2x8x10x128xf32, #tpu.memory_space<vmem>>, vector<1x1x8x8x128xf32>
    %90 = vector.shape_cast %89 : vector<1x1x8x8x128xf32> to vector<8x8x128xf32>
    %c1_91 = arith.constant 1 : index
    %c0_92 = arith.constant 0 : index
    %c0_93 = arith.constant 0 : index
    %c2_94 = arith.constant 2 : index
    %c0_95 = arith.constant 0 : index
    %91 = vector.load %arg5[%c1_91, %c0_92, %c0_93, %c2_94, %c0_95] : memref<2x2x8x10x128xf32, #tpu.memory_space<vmem>>, vector<1x1x8x8x128xf32>
    %92 = vector.shape_cast %91 : vector<1x1x8x8x128xf32> to vector<8x8x128xf32>
    %cst_96 = arith.constant 2.500000e-01 : f32
    %93 = vector.broadcast %cst_96 : f32 to vector<8x8x128xf32>
    %94 = arith.mulf %93, %90 : vector<8x8x128xf32>
    %cst_97 = arith.constant 7.500000e-01 : f32
    %95 = vector.broadcast %cst_97 : f32 to vector<8x8x128xf32>
    %96 = arith.mulf %95, %27 : vector<8x8x128xf32>
    %97 = arith.addf %94, %96 : vector<8x8x128xf32>
    %cst_98 = arith.constant 7.500000e-01 : f32
    %98 = vector.broadcast %cst_98 : f32 to vector<8x8x128xf32>
    %99 = arith.mulf %98, %27 : vector<8x8x128xf32>
    %cst_99 = arith.constant 2.500000e-01 : f32
    %100 = vector.broadcast %cst_99 : f32 to vector<8x8x128xf32>
    %101 = arith.mulf %100, %36 : vector<8x8x128xf32>
    %102 = arith.addf %99, %101 : vector<8x8x128xf32>
    %cst_100 = arith.constant 2.500000e-01 : f32
    %103 = vector.broadcast %cst_100 : f32 to vector<8x8x128xf32>
    %104 = arith.mulf %103, %27 : vector<8x8x128xf32>
    %cst_101 = arith.constant 7.500000e-01 : f32
    %105 = vector.broadcast %cst_101 : f32 to vector<8x8x128xf32>
    %106 = arith.mulf %105, %36 : vector<8x8x128xf32>
    %107 = arith.addf %104, %106 : vector<8x8x128xf32>
    %cst_102 = arith.constant 7.500000e-01 : f32
    %108 = vector.broadcast %cst_102 : f32 to vector<8x8x128xf32>
    %109 = arith.mulf %108, %36 : vector<8x8x128xf32>
    %cst_103 = arith.constant 2.500000e-01 : f32
    %110 = vector.broadcast %cst_103 : f32 to vector<8x8x128xf32>
    %111 = arith.mulf %110, %92 : vector<8x8x128xf32>
    %112 = arith.addf %109, %111 : vector<8x8x128xf32>
    %113 = vector.extract_strided_slice %73 {offsets = [0, 0, 0], sizes = [1, 8, 128], strides = [1, 1, 1]} : vector<8x8x128xf32> to vector<1x8x128xf32>
    %114 = vector.extract_strided_slice %97 {offsets = [0, 0, 0], sizes = [7, 8, 128], strides = [1, 1, 1]} : vector<8x8x128xf32> to vector<7x8x128xf32>
    %115 = tpu.concatenate %113, %114 in 0 : vector<1x8x128xf32>, vector<7x8x128xf32> -> vector<8x8x128xf32>
    %116 = vector.extract_strided_slice %73 {offsets = [1, 0, 0], sizes = [7, 8, 128], strides = [1, 1, 1]} : vector<8x8x128xf32> to vector<7x8x128xf32>
    %117 = vector.extract_strided_slice %97 {offsets = [7, 0, 0], sizes = [1, 8, 128], strides = [1, 1, 1]} : vector<8x8x128xf32> to vector<1x8x128xf32>
    %118 = tpu.concatenate %116, %117 in 0 : vector<7x8x128xf32>, vector<1x8x128xf32> -> vector<8x8x128xf32>
    %cst_104 = arith.constant 2.500000e-01 : f32
    %119 = vector.broadcast %cst_104 : f32 to vector<8x8x128xf32>
    %120 = arith.mulf %119, %115 : vector<8x8x128xf32>
    %cst_105 = arith.constant 7.500000e-01 : f32
    %121 = vector.broadcast %cst_105 : f32 to vector<8x8x128xf32>
    %122 = arith.mulf %121, %73 : vector<8x8x128xf32>
    %123 = arith.addf %120, %122 : vector<8x8x128xf32>
    %c0_106 = arith.constant 0 : index
    %c0_107 = arith.constant 0 : index
    %c0_108 = arith.constant 0 : index
    %c0_109 = arith.constant 0 : index
    %c0_110 = arith.constant 0 : index
    %124 = vector.load %arg4[%c0_106, %c0_107, %c0_108, %c0_109, %c0_110] : memref<1x4x8x8x512xf32, #tpu.memory_space<vmem>>, vector<1x1x8x8x128xf32>
    %125 = vector.shape_cast %124 : vector<1x1x8x8x128xf32> to vector<8x8x128xf32>
    %126 = vector.shape_cast %123 : vector<8x8x128xf32> to vector<1x1x8x8x128xf32>
    tpu.vector_store %arg4[%c0_106, %c0_107, %c0_108, %c0_109, %c0_110], %126 {strides = array<i32>} : memref<1x4x8x8x512xf32, #tpu.memory_space<vmem>>, vector<1x1x8x8x128xf32>,
    %cst_111 = arith.constant 7.500000e-01 : f32
    %127 = vector.broadcast %cst_111 : f32 to vector<8x8x128xf32>
    %128 = arith.mulf %127, %73 : vector<8x8x128xf32>
    %cst_112 = arith.constant 2.500000e-01 : f32
    %129 = vector.broadcast %cst_112 : f32 to vector<8x8x128xf32>
    %130 = arith.mulf %129, %97 : vector<8x8x128xf32>
    %131 = arith.addf %128, %130 : vector<8x8x128xf32>
    %c0_113 = arith.constant 0 : index
    %c1_114 = arith.constant 1 : index
    %c0_115 = arith.constant 0 : index
    %c0_116 = arith.constant 0 : index
    %c0_117 = arith.constant 0 : index
    %132 = vector.load %arg4[%c0_113, %c1_114, %c0_115, %c0_116, %c0_117] : memref<1x4x8x8x512xf32, #tpu.memory_space<vmem>>, vector<1x1x8x8x128xf32>
    %133 = vector.shape_cast %132 : vector<1x1x8x8x128xf32> to vector<8x8x128xf32>
    %134 = vector.shape_cast %131 : vector<8x8x128xf32> to vector<1x1x8x8x128xf32>
    tpu.vector_store %arg4[%c0_113, %c1_114, %c0_115, %c0_116, %c0_117], %134 {strides = array<i32>} : memref<1x4x8x8x512xf32, #tpu.memory_space<vmem>>, vector<1x1x8x8x128xf32>,
    %cst_118 = arith.constant 2.500000e-01 : f32
    %135 = vector.broadcast %cst_118 : f32 to vector<8x8x128xf32>
    %136 = arith.mulf %135, %73 : vector<8x8x128xf32>
    %cst_119 = arith.constant 7.500000e-01 : f32
    %137 = vector.broadcast %cst_119 : f32 to vector<8x8x128xf32>
    %138 = arith.mulf %137, %97 : vector<8x8x128xf32>
    %139 = arith.addf %136, %138 : vector<8x8x128xf32>
    %c0_120 = arith.constant 0 : index
    %c2_121 = arith.constant 2 : index
    %c0_122 = arith.constant 0 : index
    %c0_123 = arith.constant 0 : index
    %c0_124 = arith.constant 0 : index
    %140 = vector.load %arg4[%c0_120, %c2_121, %c0_122, %c0_123, %c0_124] : memref<1x4x8x8x512xf32, #tpu.memory_space<vmem>>, vector<1x1x8x8x128xf32>
    %141 = vector.shape_cast %140 : vector<1x1x8x8x128xf32> to vector<8x8x128xf32>
    %142 = vector.shape_cast %139 : vector<8x8x128xf32> to vector<1x1x8x8x128xf32>
    tpu.vector_store %arg4[%c0_120, %c2_121, %c0_122, %c0_123, %c0_124], %142 {strides = array<i32>} : memref<1x4x8x8x512xf32, #tpu.memory_space<vmem>>, vector<1x1x8x8x128xf32>,
    %cst_125 = arith.constant 7.500000e-01 : f32
    %143 = vector.broadcast %cst_125 : f32 to vector<8x8x128xf32>
    %144 = arith.mulf %143, %97 : vector<8x8x128xf32>
    %cst_126 = arith.constant 2.500000e-01 : f32
    %145 = vector.broadcast %cst_126 : f32 to vector<8x8x128xf32>
    %146 = arith.mulf %145, %118 : vector<8x8x128xf32>
    %147 = arith.addf %144, %146 : vector<8x8x128xf32>
    %c0_127 = arith.constant 0 : index
    %c3_128 = arith.constant 3 : index
    %c0_129 = arith.constant 0 : index
    %c0_130 = arith.constant 0 : index
    %c0_131 = arith.constant 0 : index
    %148 = vector.load %arg4[%c0_127, %c3_128, %c0_129, %c0_130, %c0_131] : memref<1x4x8x8x512xf32, #tpu.memory_space<vmem>>, vector<1x1x8x8x128xf32>
    %149 = vector.shape_cast %148 : vector<1x1x8x8x128xf32> to vector<8x8x128xf32>
    %150 = vector.shape_cast %147 : vector<8x8x128xf32> to vector<1x1x8x8x128xf32>
    tpu.vector_store %arg4[%c0_127, %c3_128, %c0_129, %c0_130, %c0_131], %150 {strides = array<i32>} : memref<1x4x8x8x512xf32, #tpu.memory_space<vmem>>, vector<1x1x8x8x128xf32>,
    %151 = vector.extract_strided_slice %78 {offsets = [0, 0, 0], sizes = [1, 8, 128], strides = [1, 1, 1]} : vector<8x8x128xf32> to vector<1x8x128xf32>
    %152 = vector.extract_strided_slice %102 {offsets = [0, 0, 0], sizes = [7, 8, 128], strides = [1, 1, 1]} : vector<8x8x128xf32> to vector<7x8x128xf32>
    %153 = tpu.concatenate %151, %152 in 0 : vector<1x8x128xf32>, vector<7x8x128xf32> -> vector<8x8x128xf32>
    %154 = vector.extract_strided_slice %78 {offsets = [1, 0, 0], sizes = [7, 8, 128], strides = [1, 1, 1]} : vector<8x8x128xf32> to vector<7x8x128xf32>
    %155 = vector.extract_strided_slice %102 {offsets = [7, 0, 0], sizes = [1, 8, 128], strides = [1, 1, 1]} : vector<8x8x128xf32> to vector<1x8x128xf32>
    %156 = tpu.concatenate %154, %155 in 0 : vector<7x8x128xf32>, vector<1x8x128xf32> -> vector<8x8x128xf32>
    %cst_132 = arith.constant 2.500000e-01 : f32
    %157 = vector.broadcast %cst_132 : f32 to vector<8x8x128xf32>
    %158 = arith.mulf %157, %153 : vector<8x8x128xf32>
    %cst_133 = arith.constant 7.500000e-01 : f32
    %159 = vector.broadcast %cst_133 : f32 to vector<8x8x128xf32>
    %160 = arith.mulf %159, %78 : vector<8x8x128xf32>
    %161 = arith.addf %158, %160 : vector<8x8x128xf32>
    %c0_134 = arith.constant 0 : index
    %c0_135 = arith.constant 0 : index
    %c0_136 = arith.constant 0 : index
    %c0_137 = arith.constant 0 : index
    %c128 = arith.constant 128 : index
    %162 = vector.load %arg4[%c0_134, %c0_135, %c0_136, %c0_137, %c128] : memref<1x4x8x8x512xf32, #tpu.memory_space<vmem>>, vector<1x1x8x8x128xf32>
    %163 = vector.shape_cast %162 : vector<1x1x8x8x128xf32> to vector<8x8x128xf32>
    %164 = vector.shape_cast %161 : vector<8x8x128xf32> to vector<1x1x8x8x128xf32>
    tpu.vector_store %arg4[%c0_134, %c0_135, %c0_136, %c0_137, %c128], %164 {strides = array<i32>} : memref<1x4x8x8x512xf32, #tpu.memory_space<vmem>>, vector<1x1x8x8x128xf32>,
    %cst_138 = arith.constant 7.500000e-01 : f32
    %165 = vector.broadcast %cst_138 : f32 to vector<8x8x128xf32>
    %166 = arith.mulf %165, %78 : vector<8x8x128xf32>
    %cst_139 = arith.constant 2.500000e-01 : f32
    %167 = vector.broadcast %cst_139 : f32 to vector<8x8x128xf32>
    %168 = arith.mulf %167, %102 : vector<8x8x128xf32>
    %169 = arith.addf %166, %168 : vector<8x8x128xf32>
    %c0_140 = arith.constant 0 : index
    %c1_141 = arith.constant 1 : index
    %c0_142 = arith.constant 0 : index
    %c0_143 = arith.constant 0 : index
    %c128_144 = arith.constant 128 : index
    %170 = vector.load %arg4[%c0_140, %c1_141, %c0_142, %c0_143, %c128_144] : memref<1x4x8x8x512xf32, #tpu.memory_space<vmem>>, vector<1x1x8x8x128xf32>
    %171 = vector.shape_cast %170 : vector<1x1x8x8x128xf32> to vector<8x8x128xf32>
    %172 = vector.shape_cast %169 : vector<8x8x128xf32> to vector<1x1x8x8x128xf32>
    tpu.vector_store %arg4[%c0_140, %c1_141, %c0_142, %c0_143, %c128_144], %172 {strides = array<i32>} : memref<1x4x8x8x512xf32, #tpu.memory_space<vmem>>, vector<1x1x8x8x128xf32>,
    %cst_145 = arith.constant 2.500000e-01 : f32
    %173 = vector.broadcast %cst_145 : f32 to vector<8x8x128xf32>
    %174 = arith.mulf %173, %78 : vector<8x8x128xf32>
    %cst_146 = arith.constant 7.500000e-01 : f32
    %175 = vector.broadcast %cst_146 : f32 to vector<8x8x128xf32>
    %176 = arith.mulf %175, %102 : vector<8x8x128xf32>
    %177 = arith.addf %174, %176 : vector<8x8x128xf32>
    %c0_147 = arith.constant 0 : index
    %c2_148 = arith.constant 2 : index
    %c0_149 = arith.constant 0 : index
    %c0_150 = arith.constant 0 : index
    %c128_151 = arith.constant 128 : index
    %178 = vector.load %arg4[%c0_147, %c2_148, %c0_149, %c0_150, %c128_151] : memref<1x4x8x8x512xf32, #tpu.memory_space<vmem>>, vector<1x1x8x8x128xf32>
    %179 = vector.shape_cast %178 : vector<1x1x8x8x128xf32> to vector<8x8x128xf32>
    %180 = vector.shape_cast %177 : vector<8x8x128xf32> to vector<1x1x8x8x128xf32>
    tpu.vector_store %arg4[%c0_147, %c2_148, %c0_149, %c0_150, %c128_151], %180 {strides = array<i32>} : memref<1x4x8x8x512xf32, #tpu.memory_space<vmem>>, vector<1x1x8x8x128xf32>,
    %cst_152 = arith.constant 7.500000e-01 : f32
    %181 = vector.broadcast %cst_152 : f32 to vector<8x8x128xf32>
    %182 = arith.mulf %181, %102 : vector<8x8x128xf32>
    %cst_153 = arith.constant 2.500000e-01 : f32
    %183 = vector.broadcast %cst_153 : f32 to vector<8x8x128xf32>
    %184 = arith.mulf %183, %156 : vector<8x8x128xf32>
    %185 = arith.addf %182, %184 : vector<8x8x128xf32>
    %c0_154 = arith.constant 0 : index
    %c3_155 = arith.constant 3 : index
    %c0_156 = arith.constant 0 : index
    %c0_157 = arith.constant 0 : index
    %c128_158 = arith.constant 128 : index
    %186 = vector.load %arg4[%c0_154, %c3_155, %c0_156, %c0_157, %c128_158] : memref<1x4x8x8x512xf32, #tpu.memory_space<vmem>>, vector<1x1x8x8x128xf32>
    %187 = vector.shape_cast %186 : vector<1x1x8x8x128xf32> to vector<8x8x128xf32>
    %188 = vector.shape_cast %185 : vector<8x8x128xf32> to vector<1x1x8x8x128xf32>
    tpu.vector_store %arg4[%c0_154, %c3_155, %c0_156, %c0_157, %c128_158], %188 {strides = array<i32>} : memref<1x4x8x8x512xf32, #tpu.memory_space<vmem>>, vector<1x1x8x8x128xf32>,
    %189 = vector.extract_strided_slice %83 {offsets = [0, 0, 0], sizes = [1, 8, 128], strides = [1, 1, 1]} : vector<8x8x128xf32> to vector<1x8x128xf32>
    %190 = vector.extract_strided_slice %107 {offsets = [0, 0, 0], sizes = [7, 8, 128], strides = [1, 1, 1]} : vector<8x8x128xf32> to vector<7x8x128xf32>
    %191 = tpu.concatenate %189, %190 in 0 : vector<1x8x128xf32>, vector<7x8x128xf32> -> vector<8x8x128xf32>
    %192 = vector.extract_strided_slice %83 {offsets = [1, 0, 0], sizes = [7, 8, 128], strides = [1, 1, 1]} : vector<8x8x128xf32> to vector<7x8x128xf32>
    %193 = vector.extract_strided_slice %107 {offsets = [7, 0, 0], sizes = [1, 8, 128], strides = [1, 1, 1]} : vector<8x8x128xf32> to vector<1x8x128xf32>
    %194 = tpu.concatenate %192, %193 in 0 : vector<7x8x128xf32>, vector<1x8x128xf32> -> vector<8x8x128xf32>
    %cst_159 = arith.constant 2.500000e-01 : f32
    %195 = vector.broadcast %cst_159 : f32 to vector<8x8x128xf32>
    %196 = arith.mulf %195, %191 : vector<8x8x128xf32>
    %cst_160 = arith.constant 7.500000e-01 : f32
    %197 = vector.broadcast %cst_160 : f32 to vector<8x8x128xf32>
    %198 = arith.mulf %197, %83 : vector<8x8x128xf32>
    %199 = arith.addf %196, %198 : vector<8x8x128xf32>
    %c0_161 = arith.constant 0 : index
    %c0_162 = arith.constant 0 : index
    %c0_163 = arith.constant 0 : index
    %c0_164 = arith.constant 0 : index
    %c256 = arith.constant 256 : index
    %200 = vector.load %arg4[%c0_161, %c0_162, %c0_163, %c0_164, %c256] : memref<1x4x8x8x512xf32, #tpu.memory_space<vmem>>, vector<1x1x8x8x128xf32>
    %201 = vector.shape_cast %200 : vector<1x1x8x8x128xf32> to vector<8x8x128xf32>
    %202 = vector.shape_cast %199 : vector<8x8x128xf32> to vector<1x1x8x8x128xf32>
    tpu.vector_store %arg4[%c0_161, %c0_162, %c0_163, %c0_164, %c256], %202 {strides = array<i32>} : memref<1x4x8x8x512xf32, #tpu.memory_space<vmem>>, vector<1x1x8x8x128xf32>,
    %cst_165 = arith.constant 7.500000e-01 : f32
    %203 = vector.broadcast %cst_165 : f32 to vector<8x8x128xf32>
    %204 = arith.mulf %203, %83 : vector<8x8x128xf32>
    %cst_166 = arith.constant 2.500000e-01 : f32
    %205 = vector.broadcast %cst_166 : f32 to vector<8x8x128xf32>
    %206 = arith.mulf %205, %107 : vector<8x8x128xf32>
    %207 = arith.addf %204, %206 : vector<8x8x128xf32>
    %c0_167 = arith.constant 0 : index
    %c1_168 = arith.constant 1 : index
    %c0_169 = arith.constant 0 : index
    %c0_170 = arith.constant 0 : index
    %c256_171 = arith.constant 256 : index
    %208 = vector.load %arg4[%c0_167, %c1_168, %c0_169, %c0_170, %c256_171] : memref<1x4x8x8x512xf32, #tpu.memory_space<vmem>>, vector<1x1x8x8x128xf32>
    %209 = vector.shape_cast %208 : vector<1x1x8x8x128xf32> to vector<8x8x128xf32>
    %210 = vector.shape_cast %207 : vector<8x8x128xf32> to vector<1x1x8x8x128xf32>
    tpu.vector_store %arg4[%c0_167, %c1_168, %c0_169, %c0_170, %c256_171], %210 {strides = array<i32>} : memref<1x4x8x8x512xf32, #tpu.memory_space<vmem>>, vector<1x1x8x8x128xf32>,
    %cst_172 = arith.constant 2.500000e-01 : f32
    %211 = vector.broadcast %cst_172 : f32 to vector<8x8x128xf32>
    %212 = arith.mulf %211, %83 : vector<8x8x128xf32>
    %cst_173 = arith.constant 7.500000e-01 : f32
    %213 = vector.broadcast %cst_173 : f32 to vector<8x8x128xf32>
    %214 = arith.mulf %213, %107 : vector<8x8x128xf32>
    %215 = arith.addf %212, %214 : vector<8x8x128xf32>
    %c0_174 = arith.constant 0 : index
    %c2_175 = arith.constant 2 : index
    %c0_176 = arith.constant 0 : index
    %c0_177 = arith.constant 0 : index
    %c256_178 = arith.constant 256 : index
    %216 = vector.load %arg4[%c0_174, %c2_175, %c0_176, %c0_177, %c256_178] : memref<1x4x8x8x512xf32, #tpu.memory_space<vmem>>, vector<1x1x8x8x128xf32>
    %217 = vector.shape_cast %216 : vector<1x1x8x8x128xf32> to vector<8x8x128xf32>
    %218 = vector.shape_cast %215 : vector<8x8x128xf32> to vector<1x1x8x8x128xf32>
    tpu.vector_store %arg4[%c0_174, %c2_175, %c0_176, %c0_177, %c256_178], %218 {strides = array<i32>} : memref<1x4x8x8x512xf32, #tpu.memory_space<vmem>>, vector<1x1x8x8x128xf32>,
    %cst_179 = arith.constant 7.500000e-01 : f32
    %219 = vector.broadcast %cst_179 : f32 to vector<8x8x128xf32>
    %220 = arith.mulf %219, %107 : vector<8x8x128xf32>
    %cst_180 = arith.constant 2.500000e-01 : f32
    %221 = vector.broadcast %cst_180 : f32 to vector<8x8x128xf32>
    %222 = arith.mulf %221, %194 : vector<8x8x128xf32>
    %223 = arith.addf %220, %222 : vector<8x8x128xf32>
    %c0_181 = arith.constant 0 : index
    %c3_182 = arith.constant 3 : index
    %c0_183 = arith.constant 0 : index
    %c0_184 = arith.constant 0 : index
    %c256_185 = arith.constant 256 : index
    %224 = vector.load %arg4[%c0_181, %c3_182, %c0_183, %c0_184, %c256_185] : memref<1x4x8x8x512xf32, #tpu.memory_space<vmem>>, vector<1x1x8x8x128xf32>
    %225 = vector.shape_cast %224 : vector<1x1x8x8x128xf32> to vector<8x8x128xf32>
    %226 = vector.shape_cast %223 : vector<8x8x128xf32> to vector<1x1x8x8x128xf32>
    tpu.vector_store %arg4[%c0_181, %c3_182, %c0_183, %c0_184, %c256_185], %226 {strides = array<i32>} : memref<1x4x8x8x512xf32, #tpu.memory_space<vmem>>, vector<1x1x8x8x128xf32>,
    %227 = vector.extract_strided_slice %88 {offsets = [0, 0, 0], sizes = [1, 8, 128], strides = [1, 1, 1]} : vector<8x8x128xf32> to vector<1x8x128xf32>
    %228 = vector.extract_strided_slice %112 {offsets = [0, 0, 0], sizes = [7, 8, 128], strides = [1, 1, 1]} : vector<8x8x128xf32> to vector<7x8x128xf32>
    %229 = tpu.concatenate %227, %228 in 0 : vector<1x8x128xf32>, vector<7x8x128xf32> -> vector<8x8x128xf32>
    %230 = vector.extract_strided_slice %88 {offsets = [1, 0, 0], sizes = [7, 8, 128], strides = [1, 1, 1]} : vector<8x8x128xf32> to vector<7x8x128xf32>
    %231 = vector.extract_strided_slice %112 {offsets = [7, 0, 0], sizes = [1, 8, 128], strides = [1, 1, 1]} : vector<8x8x128xf32> to vector<1x8x128xf32>
    %232 = tpu.concatenate %230, %231 in 0 : vector<7x8x128xf32>, vector<1x8x128xf32> -> vector<8x8x128xf32>
    %cst_186 = arith.constant 2.500000e-01 : f32
    %233 = vector.broadcast %cst_186 : f32 to vector<8x8x128xf32>
    %234 = arith.mulf %233, %229 : vector<8x8x128xf32>
    %cst_187 = arith.constant 7.500000e-01 : f32
    %235 = vector.broadcast %cst_187 : f32 to vector<8x8x128xf32>
    %236 = arith.mulf %235, %88 : vector<8x8x128xf32>
    %237 = arith.addf %234, %236 : vector<8x8x128xf32>
    %c0_188 = arith.constant 0 : index
    %c0_189 = arith.constant 0 : index
    %c0_190 = arith.constant 0 : index
    %c0_191 = arith.constant 0 : index
    %c384 = arith.constant 384 : index
    %238 = vector.load %arg4[%c0_188, %c0_189, %c0_190, %c0_191, %c384] : memref<1x4x8x8x512xf32, #tpu.memory_space<vmem>>, vector<1x1x8x8x128xf32>
    %239 = vector.shape_cast %238 : vector<1x1x8x8x128xf32> to vector<8x8x128xf32>
    %240 = vector.shape_cast %237 : vector<8x8x128xf32> to vector<1x1x8x8x128xf32>
    tpu.vector_store %arg4[%c0_188, %c0_189, %c0_190, %c0_191, %c384], %240 {strides = array<i32>} : memref<1x4x8x8x512xf32, #tpu.memory_space<vmem>>, vector<1x1x8x8x128xf32>,
    %cst_192 = arith.constant 7.500000e-01 : f32
    %241 = vector.broadcast %cst_192 : f32 to vector<8x8x128xf32>
    %242 = arith.mulf %241, %88 : vector<8x8x128xf32>
    %cst_193 = arith.constant 2.500000e-01 : f32
    %243 = vector.broadcast %cst_193 : f32 to vector<8x8x128xf32>
    %244 = arith.mulf %243, %112 : vector<8x8x128xf32>
    %245 = arith.addf %242, %244 : vector<8x8x128xf32>
    %c0_194 = arith.constant 0 : index
    %c1_195 = arith.constant 1 : index
    %c0_196 = arith.constant 0 : index
    %c0_197 = arith.constant 0 : index
    %c384_198 = arith.constant 384 : index
    %246 = vector.load %arg4[%c0_194, %c1_195, %c0_196, %c0_197, %c384_198] : memref<1x4x8x8x512xf32, #tpu.memory_space<vmem>>, vector<1x1x8x8x128xf32>
    %247 = vector.shape_cast %246 : vector<1x1x8x8x128xf32> to vector<8x8x128xf32>
    %248 = vector.shape_cast %245 : vector<8x8x128xf32> to vector<1x1x8x8x128xf32>
    tpu.vector_store %arg4[%c0_194, %c1_195, %c0_196, %c0_197, %c384_198], %248 {strides = array<i32>} : memref<1x4x8x8x512xf32, #tpu.memory_space<vmem>>, vector<1x1x8x8x128xf32>,
    %cst_199 = arith.constant 2.500000e-01 : f32
    %249 = vector.broadcast %cst_199 : f32 to vector<8x8x128xf32>
    %250 = arith.mulf %249, %88 : vector<8x8x128xf32>
    %cst_200 = arith.constant 7.500000e-01 : f32
    %251 = vector.broadcast %cst_200 : f32 to vector<8x8x128xf32>
    %252 = arith.mulf %251, %112 : vector<8x8x128xf32>
    %253 = arith.addf %250, %252 : vector<8x8x128xf32>
    %c0_201 = arith.constant 0 : index
    %c2_202 = arith.constant 2 : index
    %c0_203 = arith.constant 0 : index
    %c0_204 = arith.constant 0 : index
    %c384_205 = arith.constant 384 : index
    %254 = vector.load %arg4[%c0_201, %c2_202, %c0_203, %c0_204, %c384_205] : memref<1x4x8x8x512xf32, #tpu.memory_space<vmem>>, vector<1x1x8x8x128xf32>
    %255 = vector.shape_cast %254 : vector<1x1x8x8x128xf32> to vector<8x8x128xf32>
    %256 = vector.shape_cast %253 : vector<8x8x128xf32> to vector<1x1x8x8x128xf32>
    tpu.vector_store %arg4[%c0_201, %c2_202, %c0_203, %c0_204, %c384_205], %256 {strides = array<i32>} : memref<1x4x8x8x512xf32, #tpu.memory_space<vmem>>, vector<1x1x8x8x128xf32>,
    %cst_206 = arith.constant 7.500000e-01 : f32
    %257 = vector.broadcast %cst_206 : f32 to vector<8x8x128xf32>
    %258 = arith.mulf %257, %112 : vector<8x8x128xf32>
    %cst_207 = arith.constant 2.500000e-01 : f32
    %259 = vector.broadcast %cst_207 : f32 to vector<8x8x128xf32>
    %260 = arith.mulf %259, %232 : vector<8x8x128xf32>
    %261 = arith.addf %258, %260 : vector<8x8x128xf32>
    %c0_208 = arith.constant 0 : index
    %c3_209 = arith.constant 3 : index
    %c0_210 = arith.constant 0 : index
    %c0_211 = arith.constant 0 : index
    %c384_212 = arith.constant 384 : index
    %262 = vector.load %arg4[%c0_208, %c3_209, %c0_210, %c0_211, %c384_212] : memref<1x4x8x8x512xf32, #tpu.memory_space<vmem>>, vector<1x1x8x8x128xf32>
    %263 = vector.shape_cast %262 : vector<1x1x8x8x128xf32> to vector<8x8x128xf32>
    %264 = vector.shape_cast %261 : vector<8x8x128xf32> to vector<1x1x8x8x128xf32>
    tpu.vector_store %arg4[%c0_208, %c3_209, %c0_210, %c0_211, %c384_212], %264 {strides = array<i32>} : memref<1x4x8x8x512xf32, #tpu.memory_space<vmem>>, vector<1x1x8x8x128xf32>,
    return
  }
  func.func @transform_0(%arg0: i32) -> (i32, i32, i32, i32) {
    %c0_i32 = arith.constant 0 : i32
    %c0_i32_0 = arith.constant 0 : i32
    %c0_i32_1 = arith.constant 0 : i32
    %c0_i32_2 = arith.constant 0 : i32
    return %arg0, %c0_i32, %c0_i32_0, %c0_i32_1 : i32, i32, i32, i32
  }
  func.func @transform_1(%arg0: i32) -> (i32, i32, i32) {
    %c0_i32 = arith.constant 0 : i32
    %c0_i32_0 = arith.constant 0 : i32
    %c0_i32_1 = arith.constant 0 : i32
    %c0_i32_2 = arith.constant 0 : i32
    return %c0_i32, %c0_i32_0, %c0_i32_1 : i32, i32, i32
  }
  func.func @transform_2(%arg0: i32) -> (i32, i32) {
    %c0_i32 = arith.constant 0 : i32
    %c0_i32_0 = arith.constant 0 : i32
    %c0_i32_1 = arith.constant 0 : i32
    return %c0_i32, %c0_i32_0 : i32, i32
  }
  func.func @transform_3(%arg0: i32) -> (i32, i32, i32, i32, i32) {
    %c0_i32 = arith.constant 0 : i32
    %c0_i32_0 = arith.constant 0 : i32
    %c0_i32_1 = arith.constant 0 : i32
    %c0_i32_2 = arith.constant 0 : i32
    %c0_i32_3 = arith.constant 0 : i32
    return %arg0, %c0_i32, %c0_i32_0, %c0_i32_1, %c0_i32_2 : i32, i32, i32, i32, i32
  }
}

</mosaic_0001>

<bundles_post_ra>
// kernel: densepose_chart_predictor_forward.1
= control target key start
LH: loop header
LB: loop body
LE: loop exit
PB: predicated region body
PF: predicated region fallthrough
CT: control target
= control target key end

     0   :  { %s1905_s12 = smov 0   ;;  %s2648_s0 = inlined_call_operand.vmem [shape: bf16[2,9,9,32], index: 0, kind: input, shape index: {}]   ;;  %s2649_s1 = inlined_call_operand.vmem [shape: bf16[4,32,128], index: 1, kind: input, shape index: {}]   ;;  %s2650_s2 = inlined_call_operand.vmem [shape: f32[1,128], index: 2, kind: input, shape index: {}]   ;;  %s2651_s3 = inlined_call_operand.vmem [shape: f32[2,4,8,8,512], index: 3, kind: output, shape index: {}]  }
   0x1 LB: > { %s1596_s13 = sadd.s32 4294967295, %s1883_s12   ;;  %p1600_p0 = scmp.ge.s32.totalorder %s1883_s12, 1  ;;  %s1883_s12 = sphi %s1905_s12, %s13_s12  }
   0x2   : > { %p137_p1 = scmp.lt.s32.totalorder %s1883_s12, 3 }
   0x4   : > { %p138_p2 = pnand %p1600_p0, %p137_p1 }
   0x6   : > { %141 = sbr.rel (%p138_p2) target bundleno = 350 (0x15e), region = 32 }
   0xb   : > { %v1861_v0 = vld [vmem:[%s2649_s1 + $0x8] sm:$0xff]   ;;  %p161_p3 = scmp.lt.s32.totalorder %s1596_s13, 1  ;;  %v1862_v1 = vld [vmem:[%s2649_s1] sm:$0xff]   ;;  %v1863_v2 = vld [vmem:[%s2649_s1 + $0x18] sm:$0xff]   ;;  %vm317_vm0 = vsmask.f32 3328 }
   0xc   : > { %1804 = vmatprep.subr.bf16.mxu0 %v1861_v0  ;;  %v1866_v3 = vld [vmem:[%s2649_s1 + $0x10] sm:$0xff]   ;;  %1816 = vmatprep.subr.bf16.mxu1 %v1863_v2  ;;  %vm318_vm1 = vsmask.f32 7440  ;;  %vm223_vm2 = vcmask 261120   ;;  %v1867_v4 = vld [vmem:[%s2649_s1 + $0x28] sm:$0xff]   ;;  %v1947_v17 = vld [vmem:[%s2649_s1 + $0x38] sm:$0xff]  }
   0xd   : > { %s2748_s13 = smov (!%p161_p3, %s1596_s13), 1  ;;  %1805 = vmatpush3.bf16.msra.mxu0 %v1861_v0  ;;  %1817 = vmatpush3.bf16.msra.mxu1 %v1863_v2  ;;  %v1871_v19 = vld [vmem:[%s2649_s1 + $0x20] sm:$0xff]   ;;  %vm1959_vm3 = vmor %vm317_vm0, %vm318_vm1 }
   0xe   : > { %1806 = vmatprep.subr.bf16.mxu0 %v1862_v1  ;;  %s1852_s22 = smul.u32 72, %s2748_s13  ;;  %1818 = vmatprep.subr.bf16.mxu1 %v1866_v3  ;;  %s1779_s9 = sshll.u32 %s2748_s13, 10 }
   0xf   : > { %s2115_s13 = scalar_lea.vmem %s2651_s3, %s1779_s9 }
  0x10   : > { %s1931_s25 = scalar_lea.vmem %s2648_s0, %s1852_s22 }
  0x11   : > { %1807 = vmatpush3.bf16.msra.mxu0 %v1862_v1  ;;  %v1864_v5 = vld [vmem:[%s1931_s25] ss:$8 sps:$4 sm:$0xff]   ;;  %v1865_v6 = vld [vmem:[%s1931_s25 + $0x10] ss:$8 sps:$4 sm:$0xff]   ;;  %1819 = vmatpush3.bf16.msra.mxu1 %v1866_v3  ;;  %v302_v8 = vld [vmem:[%s1931_s25 + $0x4] sm:$0x1] }
  0x12   : > { %1828 = vmatprep.subr.bf16.mxu0 %v1867_v4  ;;  %1808 = vmatprep.mubr.msk.bf16.mxu0 %vm223_vm2, %v1864_v5  ;;  %v301_v7 = vld [vmem:[%s1931_s25] sm:$0xf]  ;;  %v303_v9 = vld [vmem:[%s1931_s25 + $0x8] sm:$0xf]  ;;  %v304_v10 = vld [vmem:[%s1931_s25 + $0xc] sm:$0x1] }
  0x13   : > { %v321_v11 = vshrl.u32 %v301_v7, 16  ;;  %v324_v12 = vshll.u32 %v301_v7, 16  ;;  %v330_v13 = vshll.u32 %v302_v8, 16  ;;  %v335_v14 = vshrl.u32 %v303_v9, 16  ;;  %v305_v18 = vld [vmem:[%s1931_s25 + $0x10] sm:$0xf]  ;;  %1840 = vmatprep.subr.bf16.mxu1 %v1947_v17 }
  0x14   : > { %1809 = vmatmul.mubr.msk.bf16.vlgmr.msra.gmra.mxu0 %vm223_vm2, %v1865_v6  ;;  %v338_v15 = vshll.u32 %v303_v9, 16  ;;  %v344_v16 = vshll.u32 %v304_v10, 16  ;;  %v306_v24 = vld [vmem:[%s1931_s25 + $0x14] sm:$0x1]  ;;  %v307_v27 = vld [vmem:[%s1931_s25 + $0x18] sm:$0xf] }
  0x15   : > { %1829 = vmatpush3.bf16.msra.mxu0 %v1867_v4  ;;  %v323_v20 = vrot.slane %v321_v11, 4  ;;  %v326_v21 = vrot.slane %v324_v12, 5  ;;  %v332_v22 = vrot.slane %v330_v13, 5  ;;  %v337_v23 = vrot.slane %v335_v14, 4  ;;  %v308_v28 = vld [vmem:[%s1931_s25 + $0x1c] sm:$0x1] }
  0x16   : > { %v340_v25 = vrot.slane %v338_v15, 5  ;;  %v346_v26 = vrot.slane %v344_v16, 5  ;;  %1830 = vmatprep.subr.bf16.mxu0 %v1871_v19  ;;  %v349_v30 = vshrl.u32 %v305_v18, 16  ;;  %v352_v31 = vshll.u32 %v305_v18, 16  ;;  %v1869_v42 = vld [vmem:[%s1931_s25 + $0x20] ss:$8 sps:$4 sm:$0xff]  }
  0x17   : > { %v327_v29 = vor.u32 %v326_v21, %v323_v20  ;;  %v358_v32 = vshll.u32 %v306_v24, 16  ;;  %v363_v35 = vshrl.u32 %v307_v27, 16  ;;  %v366_v36 = vshll.u32 %v307_v27, 16  ;;  %1812 = vmatprep.mubr.msk.bf16.mxu0 %vm223_vm2, %v1869_v42  ;;  %v1870_v49 = vld [vmem:[%s1931_s25 + $0x30] ss:$8 sps:$4 sm:$0xff]  }
  0x18   : > { %v341_v34 = vor.u32 %v340_v25, %v337_v23  ;;  %v372_v37 = vshll.u32 %v308_v28, 16  ;;  %v351_v39 = vrot.slane %v349_v30, 4  ;;  %v354_v40 = vrot.slane %v352_v31, 5  ;;  %v309_v52 = vld [vmem:[%s1931_s25 + $0x20] sm:$0xf]  ;;  %v1872_v7 = vld [vmem:[%s2649_s1 + $0x30] sm:$0xff]  }
  0x19   : > { %1831 = vmatpush3.bf16.msra.mxu0 %v1871_v19  ;;  %v328_v38 = vrot.slane %v327_v29, 4  ;;  %v360_v41 = vrot.slane %v358_v32, 5  ;;  %v365_v44 = vrot.slane %v363_v35, 4  ;;  %v368_v45 = vrot.slane %v366_v36, 5  ;;  %v310_v53 = vld [vmem:[%s1931_s25 + $0x24] sm:$0x1] }
  0x1a   : > { %v342_v43 = vrot.slane %v341_v34, 4  ;;  %v374_v46 = vrot.slane %v372_v37, 5  ;;  %v355_v48 = vor.u32 %v354_v40, %v351_v39  ;;  %v311_v56 = vld [vmem:[%s1931_s25 + $0x28] sm:$0xf]  ;;  %v312_v57 = vld [vmem:[%s1931_s25 + $0x2c] sm:$0x1] }
  0x1b   : > { %v333_v47 = vsel %vm1959_vm3, %v328_v38, %v332_v22  ;;  %v369_v51 = vor.u32 %v368_v45, %v365_v44  ;;  %v377_v58 = vshrl.u32 %v309_v52, 16  ;;  %v380_v60 = vshll.u32 %v309_v52, 16  ;;  %v313_v8 = vld [vmem:[%s1931_s25 + $0x30] sm:$0xf]  ;;  %v314_v12 = vld [vmem:[%s1931_s25 + $0x34] sm:$0x1] }
  0x1c   : > { %v347_v50 = vsel %vm1959_vm3, %v342_v43, %v346_v26  ;;  %v356_v55 = vrot.slane %v355_v48, 4  ;;  %1813 = vmatmul.mubr.msk.bf16.gmra.mxu0 %vm223_vm2, %v1870_v49  ;;  %v386_v61 = vshll.u32 %v310_v53, 16  ;;  %v391_v62 = vshrl.u32 %v311_v56, 16  ;;  %v315_v13 = vld [vmem:[%s1931_s25 + $0x38] sm:$0xf] }
  0x1d   : > { %v1619_v54 = vcombine.low %v333_v47, %v347_v50  ;;  %v370_v59 = vrot.slane %v369_v51, 4  ;;  %v379_v0 = vrot.slane %v377_v58, 4  ;;  %v394_v1 = vshll.u32 %v311_v56, 16  ;;  %v316_v15 = vld [vmem:[%s1931_s25 + $0x3c] sm:$0x1] }
  0x1e   : > { %v361_v63 = vsel %vm1959_vm3, %v356_v55, %v360_v41  ;;  %v400_v2 = vshll.u32 %v312_v57, 16  ;;  %v382_v4 = vrot.slane %v380_v60, 5  ;;  %v388_v5 = vrot.slane %v386_v61, 5  ;;  %v1873_v32 = vld [vmem:[%s1931_s25 + $0x8] ss:$8 sps:$4 sm:$0xff]  }
  0x1f   : > { %1820 = vmatprep.mubr.msk.bf16.mxu1 %vm223_vm2, %v1619_v54  ;;  %v375_v3 = vsel %vm1959_vm3, %v370_v59, %v374_v46  ;;  %v393_v6 = vrot.slane %v391_v62, 4  ;;  %v396_v10 = vrot.slane %v394_v1, 5  ;;  %v405_v16 = vshrl.u32 %v313_v8, 16  ;;  %v1874_v36 = vld [vmem:[%s1931_s25 + $0x18] ss:$8 sps:$4 sm:$0xff]   ;;  %1832 = vmatprep.mubr.msk.bf16.mxu0 %vm223_vm2, %v1873_v32 }
  0x20   : > { %v1620_v9 = vcombine.low %v361_v63, %v375_v3  ;;  %v402_v11 = vrot.slane %v400_v2, 5  ;;  %v383_v14 = vor.u32 %v382_v4, %v379_v0  ;;  %v408_v18 = vshll.u32 %v313_v8, 16  ;;  %v1651_v38 = vld [vmem:[%s1931_s25 + $0x8] sm:$0xf]  ;;  %v1652_v39 = vld [vmem:[%s1931_s25 + $0xc] sm:$0x1] }
  0x21   : > { %v414_v19 = vshll.u32 %v314_v12, 16  ;;  %v397_v20 = vor.u32 %v396_v10, %v393_v6  ;;  %v419_v21 = vshrl.u32 %v315_v13, 16  ;;  %v422_v22 = vshll.u32 %v315_v13, 16  ;;  %v1653_v40 = vld [vmem:[%s1931_s25 + $0x10] sm:$0xf] }
  0x22   : > { %1821 = vmatmul.mubr.msk.bf16.vlgmr.msra.gmra.mxu1 %vm223_vm2, %v1620_v9  ;;  %v428_v23 = vshll.u32 %v316_v15, 16  ;;  %v384_v24 = vrot.slane %v383_v14, 4  ;;  %v407_v25 = vrot.slane %v405_v16, 4  ;;  %v410_v26 = vrot.slane %v408_v18, 5  ;;  %v1654_v43 = vld [vmem:[%s1931_s25 + $0x14] sm:$0x1] }
  0x23   : > { %1841 = vmatpush3.bf16.msra.mxu1 %v1947_v17  ;;  %v416_v27 = vrot.slane %v414_v19, 5  ;;  %v398_v28 = vrot.slane %v397_v20, 4  ;;  %v421_v29 = vrot.slane %v419_v21, 4  ;;  %v424_v30 = vrot.slane %v422_v22, 5  ;;  %v1655_v50 = vld [vmem:[%s1931_s25 + $0x18] sm:$0xf] }
  0x24   : > { %1842 = vmatprep.subr.bf16.mxu1 %v1872_v7  ;;  %v430_v31 = vrot.slane %v428_v23, 5  ;;  %v389_v34 = vsel %vm1959_vm3, %v384_v24, %v388_v5  ;;  %v411_v35 = vor.u32 %v410_v26, %v407_v25  ;;  %1833 = vmatmul.mubr.msk.bf16.vlgmr.msra.gmra.mxu0 %vm223_vm2, %v1874_v36  ;;  %v678_v44 = vshrl.u32 %v1651_v38, 16  ;;  %v1656_v55 = vld [vmem:[%s1931_s25 + $0x1c] sm:$0x1]  ;;  %v1657_v60 = vld [vmem:[%s1931_s25 + $0x20] sm:$0xf] }
  0x25   : > { %v403_v17 = vsel %vm1959_vm3, %v398_v28, %v402_v11  ;;  %v425_v37 = vor.u32 %v424_v30, %v421_v29  ;;  %v681_v45 = vshll.u32 %v1651_v38, 16  ;;  %v687_v47 = vshll.u32 %v1652_v39, 16  ;;  %v1658_v0 = vld [vmem:[%s1931_s25 + $0x24] sm:$0x1]  ;;  %v1875_v10 = vld [vmem:[%s1931_s25 + $0x28] ss:$8 sps:$4 sm:$0xff]  }
  0x26   : > { %v1621_v41 = vcombine.low %v389_v34, %v403_v17  ;;  %v412_v42 = vrot.slane %v411_v35, 4  ;;  %v692_v48 = vshrl.u32 %v1653_v40, 16  ;;  %v695_v49 = vshll.u32 %v1653_v40, 16  ;;  %1836 = vmatprep.mubr.msk.bf16.mxu0 %vm223_vm2, %v1875_v10  ;;  %v1876_v19 = vld [vmem:[%s1931_s25 + $0x38] ss:$8 sps:$4 sm:$0xff]  }
  0x27   : > { %1843 = vmatpush3.bf16.msra.mxu1 %v1872_v7  ;;  %v426_v46 = vrot.slane %v425_v37, 4  ;;  %v680_v52 = vrot.slane %v678_v44, 4  ;;  %v683_v53 = vrot.slane %v681_v45, 5  ;;  %v701_v54 = vshll.u32 %v1654_v43, 16  ;;  %v1659_v22 = vld [vmem:[%s1931_s25 + $0x28] sm:$0xf] }
  0x28   : > { %1824 = vmatprep.mubr.msk.bf16.mxu1 %vm223_vm2, %v1621_v41  ;;  %v417_v51 = vsel %vm1959_vm3, %v412_v42, %v416_v27  ;;  %v689_v57 = vrot.slane %v687_v47, 5  ;;  %v694_v58 = vrot.slane %v692_v48, 4  ;;  %v697_v59 = vrot.slane %v695_v49, 5  ;;  %v1660_v23 = vld [vmem:[%s1931_s25 + $0x2c] sm:$0x1] }
  0x29   : > { %v431_v56 = vsel %vm1959_vm3, %v426_v46, %v430_v31  ;;  %v684_v62 = vor.u32 %v683_v53, %v680_v52  ;;  %v703_v63 = vrot.slane %v701_v54, 5  ;;  %v706_v1 = vshrl.u32 %v1655_v50, 16  ;;  %v1661_v24 = vld [vmem:[%s1931_s25 + $0x30] sm:$0xf]  ;;  %v1662_v27 = vld [vmem:[%s1931_s25 + $0x34] sm:$0x1] }
  0x2a   : > { %v1622_v61 = vcombine.low %v417_v51, %v431_v56  ;;  %v698_v2 = vor.u32 %v697_v59, %v694_v58  ;;  %v709_v3 = vshll.u32 %v1655_v50, 16  ;;  %v715_v4 = vshll.u32 %v1656_v55, 16  ;;  %v1663_v35 = vld [vmem:[%s1931_s25 + $0x38] sm:$0xf]  ;;  %v1664_v39 = vld [vmem:[%s1931_s25 + $0x3c] sm:$0x1] }
  0x2b   : > { %v720_v5 = vshrl.u32 %v1657_v60, 16  ;;  %v685_v6 = vrot.slane %v684_v62, 4  ;;  %v708_v7 = vrot.slane %v706_v1, 4  ;;  %v723_v8 = vshll.u32 %v1657_v60, 16  ;;  %v1665_v44 = vld [vmem:[%s1931_s25 + $0x40] sm:$0xf] }
  0x2c   : > { %1825 = vmatmul.mubr.msk.bf16.gmra.mxu1 %vm223_vm2, %v1622_v61  ;;  %v729_v9 = vshll.u32 %v1658_v0, 16  ;;  %v699_v11 = vrot.slane %v698_v2, 4  ;;  %v711_v12 = vrot.slane %v709_v3, 5  ;;  %v717_v13 = vrot.slane %v715_v4, 5  ;;  %1837 = vmatmul.mubr.msk.bf16.gmra.mxu0 %vm223_vm2, %v1876_v19  ;;  %v1666_v48 = vld [vmem:[%s1931_s25 + $0x44] sm:$0x1] }
  0x2d   : > { %v722_v14 = vrot.slane %v720_v5, 4  ;;  %v690_v15 = vsel %vm1959_vm3, %v685_v6, %v689_v57  ;;  %v725_v16 = vrot.slane %v723_v8, 5  ;;  %v734_v28 = vshrl.u32 %v1659_v22, 16 }
  0x2e   : > { %v731_v18 = vrot.slane %v729_v9, 5  ;;  %v704_v20 = vsel %vm1959_vm3, %v699_v11, %v703_v63  ;;  %v712_v21 = vor.u32 %v711_v12, %v708_v7  ;;  %v737_v29 = vshll.u32 %v1659_v22, 16  ;;  %v2046_v11 = vld [vmem:[%s2650_s2] ss:$0 sm:$0xff] }
  0x2f   : > { %v1671_v25 = vcombine.low %v690_v15, %v704_v20  ;;  %v726_v26 = vor.u32 %v725_v16, %v722_v14  ;;  %v743_v31 = vshll.u32 %v1660_v23, 16  ;;  %v748_v32 = vshrl.u32 %v1661_v24, 16 }
  0x30   : > { %v713_v30 = vrot.slane %v712_v21, 4  ;;  %v751_v34 = vshll.u32 %v1661_v24, 16  ;;  %v736_v17 = vrot.slane %v734_v28, 4  ;;  %v739_v37 = vrot.slane %v737_v29, 5 }
  0x31   : > { %1844 = vmatprep.mubr.msk.bf16.mxu1 %vm223_vm2, %v1671_v25  ;;  %v727_v36 = vrot.slane %v726_v26, 4  ;;  %v757_v38 = vshll.u32 %v1662_v27, 16  ;;  %v745_v41 = vrot.slane %v743_v31, 5  ;;  %v750_v42 = vrot.slane %v748_v32, 4 }
  0x32   : > { %v718_v40 = vsel %vm1959_vm3, %v713_v30, %v717_v13  ;;  %v753_v43 = vrot.slane %v751_v34, 5  ;;  %v740_v46 = vor.u32 %v739_v37, %v736_v17  ;;  %v762_v49 = vshrl.u32 %v1663_v35, 16 }
  0x33   : > { %v732_v45 = vsel %vm1959_vm3, %v727_v36, %v731_v18  ;;  %v759_v47 = vrot.slane %v757_v38, 5  ;;  %v765_v52 = vshll.u32 %v1663_v35, 16  ;;  %v771_v53 = vshll.u32 %v1664_v39, 16 }
  0x34   : > { %v1672_v50 = vcombine.low %v718_v40, %v732_v45  ;;  %v754_v51 = vor.u32 %v753_v43, %v750_v42  ;;  %v741_v54 = vrot.slane %v740_v46, 4  ;;  %v764_v55 = vrot.slane %v762_v49, 4 }
  0x35   : > { %v776_v56 = vshrl.u32 %v1665_v44, 16  ;;  %v779_v57 = vshll.u32 %v1665_v44, 16  ;;  %v767_v59 = vrot.slane %v765_v52, 5  ;;  %v785_v60 = vshll.u32 %v1666_v48, 16 }
  0x36   : > { %1845 = vmatmul.mubr.msk.bf16.vlgmr.msra.gmra.mxu1 %vm223_vm2, %v1672_v50  ;;  %v755_v58 = vrot.slane %v754_v51, 4  ;;  %v746_v61 = vsel %vm1959_vm3, %v741_v54, %v745_v41  ;;  %v773_v2 = vrot.slane %v771_v53, 5 }
  0x37   : > { %v778_v62 = vrot.slane %v776_v56, 4  ;;  %v781_v63 = vrot.slane %v779_v57, 5  ;;  %v768_v1 = vor.u32 %v767_v59, %v764_v55  ;;  %v787_v5 = vrot.slane %v785_v60, 5 }
  0x38   : > { %v760_v0 = vsel %vm1959_vm3, %v755_v58, %v759_v47 }
  0x39   : > { %v1673_v3 = vcombine.low %v746_v61, %v760_v0  ;;  %v782_v4 = vor.u32 %v781_v63, %v778_v62  ;;  %v769_v6 = vrot.slane %v768_v1, 4 }
  0x3b   : > { %1848 = vmatprep.mubr.msk.bf16.mxu1 %vm223_vm2, %v1673_v3  ;;  %v783_v7 = vrot.slane %v782_v4, 4  ;;  %v774_v8 = vsel %vm1959_vm3, %v769_v6, %v773_v2 }
  0x3d   : > { %v788_v9 = vsel %vm1959_vm3, %v783_v7, %v787_v5 }
  0x3e   : > { %v1674_v10 = vcombine.low %v774_v8, %v788_v9 }
  0x40   : > { %1849 = vmatmul.mubr.msk.bf16.gmra.mxu1 %vm223_vm2, %v1674_v10 }
  0xd4   : > { %v1810_v12 = vpop.f32.mrf.mxu0 }
  0xd5   : > { %v279_v13 = vadd.f32 %v1810_v12, %v2046_v11 }
  0xd6   : > { %v270_v14 = vpop.f32.mrf.mxu0 }
  0xd7   : > { %897 = vst [vmem:[#allocation2 + $0x21] sm:$0xff] %v279_v13  ;;  %914 = vst [vmem:[#allocation2 + $0xa0] sm:$0x1] %v279_v13  ;;  %v271_v15 = vadd.f32 %v2046_v11, %v270_v14  ;;  %v2055_v26 = vmul.f32 0.75, %v279_v13  ;;  %v1020_v29 = vmul.f32 0.25, %v279_v13 }
  0xd8   : > { %v1811_v16 = vpop.f32.mrf.mxu0 }
  0xd9   : > { %895 = vst [vmem:[#allocation2 + $0x1] sm:$0xff] %v271_v15  ;;  %912 = vst [vmem:[#allocation2 + $0x80] sm:$0x1] %v271_v15  ;;  %v282_v33 = vadd.f32 %v1811_v16, %v2046_v11  ;;  %v2057_v30 = vmul.f32 0.75, %v271_v15  ;;  %v1018_v34 = vmul.f32 0.25, %v271_v15 }
  0xda   : > { %v273_v18 = vpop.f32.mrf.mxu0 }
  0xdb   : > { %898 = vst [vmem:[#allocation2 + $0x31] sm:$0xff] %v282_v33  ;;  %915 = vst [vmem:[#allocation2 + $0xb0] sm:$0x1] %v282_v33  ;;  %v274_v19 = vadd.f32 %v2046_v11, %v273_v18  ;;  %v2061_v35 = vmul.f32 0.75, %v282_v33  ;;  %v1021_v36 = vmul.f32 0.25, %v282_v33 }
  0xdc   : > { %v1814_v20 = vpop.f32.mrf.mxu0 }
  0xdd   : > { %896 = vst [vmem:[#allocation2 + $0x11] sm:$0xff] %v274_v19  ;;  %913 = vst [vmem:[#allocation2 + $0x90] sm:$0x1] %v274_v19  ;;  %v295_v21 = vadd.f32 %v1814_v20, %v2046_v11  ;;  %v2063_v17 = vmul.f32 0.75, %v274_v19  ;;  %v2065_v38 = vmul.f32 0.25, %v274_v19 }
  0xde   : > { %v286_v22 = vpop.f32.mrf.mxu0 }
  0xdf   : > { %901 = vst [vmem:[#allocation2 + $0x61] sm:$0xff] %v295_v21  ;;  %918 = vst [vmem:[#allocation2 + $0xe0] sm:$0x1] %v295_v21  ;;  %v287_v23 = vadd.f32 %v2046_v11, %v286_v22  ;;  %v2068_v42 = vmul.f32 0.75, %v295_v21  ;;  %v2070_v43 = vmul.f32 0.25, %v295_v21 }
  0xe0   : > { %v1815_v24 = vpop.f32.mrf.mxu0 }
  0xe1   : > { %899 = vst [vmem:[#allocation2 + $0x41] sm:$0xff] %v287_v23  ;;  %916 = vst [vmem:[#allocation2 + $0xc0] sm:$0x1] %v287_v23  ;;  %v298_v25 = vadd.f32 %v1815_v24, %v2046_v11  ;;  %v2072_v44 = vmul.f32 0.75, %v287_v23  ;;  %v2074_v45 = vmul.f32 0.25, %v287_v23 }
  0xe2   : > { %v1822_v27 = vpop.f32.mrf.mxu1  ;;  %v289_v28 = vpop.f32.mrf.mxu0 }
  0xe3   : > { %v516_v31 = vadd.f32 %v1822_v27, %v2046_v11  ;;  %902 = vst [vmem:[#allocation2 + $0x71] sm:$0xff] %v298_v25  ;;  %919 = vst [vmem:[#allocation2 + $0xf0] sm:$0x1] %v298_v25  ;;  %v290_v32 = vadd.f32 %v2046_v11, %v289_v28  ;;  %v2080_v53 = vmul.f32 0.75, %v298_v25  ;;  %v2082_v54 = vmul.f32 0.25, %v298_v25 }
  0xe4   : > { %v507_v37 = vpop.f32.mrf.mxu1  ;;  %v1834_v51 = vpop.f32.mrf.mxu0 }
  0xe5   : > { %906 = vst [vmem:[#allocation2 + $0xa1] sm:$0xff] %v516_v31  ;;  %922 = vst [vmem:[#allocation2 + $0x22] sm:$0x80] %v516_v31  ;;  %v1004_v39 = vmul.f32 0.25, %v516_v31  ;;  %v1028_v40 = vmul.f32 0.75, %v516_v31  ;;  %v508_v41 = vadd.f32 %v2046_v11, %v507_v37  ;;  %v639_v56 = vadd.f32 %v1834_v51, %v2046_v11 }
  0xe6   : > { %900 = vst [vmem:[#allocation2 + $0x51] sm:$0xff] %v290_v32  ;;  %917 = vst [vmem:[#allocation2 + $0xd0] sm:$0x1] %v290_v32  ;;  %v1823_v46 = vpop.f32.mrf.mxu1  ;;  %v2089_v59 = vmul.f32 0.75, %v290_v32  ;;  %v2091_v60 = vmul.f32 0.25, %v290_v32  ;;  %v630_v1 = vpop.f32.mrf.mxu0 }
  0xe7   : > { %v1012_v47 = vadd.f32 %v1004_v39, %v2055_v26  ;;  %v1036_v48 = vadd.f32 %v1028_v40, %v1020_v29  ;;  %904 = vst [vmem:[#allocation2 + $0x81] sm:$0xff] %v508_v41  ;;  %920 = vst [vmem:[#allocation2 + $0x2] sm:$0x80] %v508_v41  ;;  %v1002_v49 = vmul.f32 0.25, %v508_v41  ;;  %v2077_v50 = vmul.f32 0.75, %v508_v41 }
  0xe8   : > { %v519_v52 = vadd.f32 %v1823_v46, %v2046_v11  ;;  %v510_v55 = vpop.f32.mrf.mxu1  ;;  %931 = vst [vmem:[#allocation2 + $0x121] sm:$0xff] %v639_v56  ;;  %948 = vst [vmem:[#allocation2 + $0x1a0] sm:$0x1] %v639_v56  ;;  %v2102_v5 = vadd.f32 %v2046_v11, %v630_v1  ;;  %v2124_v23 = vmul.f32 0.75, %v639_v56 }
  0xe9   : > { %v2085_v57 = vmul.f32 0.75, %v1012_v47  ;;  %v2087_v58 = vmul.f32 0.25, %v1012_v47  ;;  %v1010_v61 = vadd.f32 %v1002_v49, %v2057_v30  ;;  %v1034_v62 = vadd.f32 %v2077_v50, %v1018_v34 }
  0xea   : > { %907 = vst [vmem:[#allocation2 + $0xb1] sm:$0xff] %v519_v52  ;;  %923 = vst [vmem:[#allocation2 + $0x32] sm:$0x80] %v519_v52  ;;  %v1005_v63 = vmul.f32 0.25, %v519_v52  ;;  %v1029_v0 = vmul.f32 0.75, %v519_v52  ;;  %v2096_v2 = vmul.f32 0.75, %v1036_v48  ;;  %v511_v4 = vadd.f32 %v2046_v11, %v510_v55 }
  0xeb   : > { %v2098_v3 = vmul.f32 0.25, %v1036_v48  ;;  %v2104_v8 = vmul.f32 0.25, %v1010_v61  ;;  %v2106_v9 = vmul.f32 0.75, %v1010_v61  ;;  %v2108_v10 = vmul.f32 0.25, %v1034_v62  ;;  %929 = vst [vmem:[#allocation2 + $0x101] sm:$0xff] %v2102_v5 }
  0xec   : > { %v964_v6 = vld [vmem:[#allocation2 + $0xa0] sm:$0xff]  ;;  %v2110_v12 = vmul.f32 0.75, %v1034_v62  ;;  %v1013_v15 = vadd.f32 %v1005_v63, %v2061_v35  ;;  %v1037_v16 = vadd.f32 %v1029_v0, %v1021_v36  ;;  %905 = vst [vmem:[#allocation2 + $0x91] sm:$0xff] %v511_v4  ;;  %921 = vst [vmem:[#allocation2 + $0x12] sm:$0x80] %v511_v4  ;;  %v1826_v33 = vpop.f32.mrf.mxu1  ;;  %v1003_v22 = vmul.f32 0.25, %v511_v4 }
  0xed   : > { %v972_v7 = vld [vmem:[#allocation2 + $0x22] sm:$0xff]  ;;  %v980_v13 = vmul.f32 0.25, %v964_v6  ;;  %946 = vst [vmem:[#allocation2 + $0x180] sm:$0x1] %v2102_v5  ;;  %v1269_v20 = vadd.f32 %v2106_v9, %v2104_v8  ;;  %v1027_v32 = vmul.f32 0.75, %v511_v4  ;;  %v2133_v36 = vmul.f32 0.25, %v639_v56 }
  0xee   : > { %v1044_v14 = vmul.f32 0.25, %v972_v7  ;;  %v962_v18 = vld [vmem:[#allocation2 + $0x80] sm:$0xff]  ;;  %v1365_v21 = vadd.f32 %v2110_v12, %v2108_v10  ;;  %v2129_v29 = vmul.f32 0.75, %v1013_v15  ;;  %v2131_v31 = vmul.f32 0.25, %v1013_v15  ;;  %v523_v34 = vpop.f32.mrf.mxu1 }
  0xef   : > { %v970_v19 = vld [vmem:[#allocation2 + $0x2] sm:$0xff]  ;;  %v996_v24 = vadd.f32 %v2055_v26, %v980_v13  ;;  %v978_v27 = vmul.f32 0.25, %v962_v18  ;;  %1277 = vst [vmem:[%s2115_s13 + $0x8] sm:$0xff] %v1269_v20  ;;  %v2139_v26 = vmul.f32 0.75, %v1037_v16  ;;  %v1011_v55 = vadd.f32 %v1003_v22, %v2063_v17 }
  0xf0   : > { %v1052_v25 = vadd.f32 %v1044_v14, %v1028_v40  ;;  %v1042_v28 = vmul.f32 0.25, %v970_v19  ;;  %1373 = vst [vmem:[%s2115_s13 + $0x10] sm:$0xff] %v1365_v21  ;;  %v2141_v40 = vmul.f32 0.25, %v1037_v16  ;;  %v532_v56 = vadd.f32 %v1826_v33, %v2046_v11  ;;  %v1827_v15 = vpop.f32.mrf.mxu1 }
  0xf1   : > { %v2135_v37 = vmul.f32 0.75, %v996_v24  ;;  %v2137_v39 = vmul.f32 0.25, %v996_v24  ;;  %v965_v41 = vld [vmem:[#allocation2 + $0xb0] sm:$0xff]  ;;  %v994_v47 = vadd.f32 %v2057_v30, %v978_v27  ;;  %v524_v61 = vadd.f32 %v2046_v11, %v523_v34 }
  0xf2   : > { %v973_v46 = vld [vmem:[#allocation2 + $0x32] sm:$0xff]  ;;  %v1050_v48 = vadd.f32 %v1042_v28, %v2077_v50  ;;  %v981_v49 = vmul.f32 0.25, %v965_v41  ;;  %v2145_v52 = vmul.f32 0.75, %v1052_v25  ;;  %910 = vst [vmem:[#allocation2 + $0xe1] sm:$0xff] %v532_v56  ;;  %926 = vst [vmem:[#allocation2 + $0x62] sm:$0x80] %v532_v56 }
  0xf3   : > { %v1045_v51 = vmul.f32 0.25, %v973_v46  ;;  %v2150_v62 = vmul.f32 0.25, %v994_v47  ;;  %v2152_v63 = vmul.f32 0.75, %v994_v47  ;;  %v963_v30 = vld [vmem:[#allocation2 + $0x90] sm:$0xff]  ;;  %908 = vst [vmem:[#allocation2 + $0xc1] sm:$0xff] %v524_v61  ;;  %v2159_v16 = vmul.f32 0.25, %v1052_v25  ;;  %v526_v46 = vpop.f32.mrf.mxu1 }
  0xf4   : > { %v2154_v1 = vmul.f32 0.25, %v1050_v48  ;;  %v2156_v4 = vmul.f32 0.75, %v1050_v48  ;;  %v971_v50 = vld [vmem:[#allocation2 + $0x12] sm:$0xff]  ;;  %v997_v6 = vadd.f32 %v2061_v35, %v981_v49  ;;  %v979_v13 = vmul.f32 0.25, %v963_v30  ;;  %924 = vst [vmem:[#allocation2 + $0x42] sm:$0x80] %v524_v61 }
  0xf5   : > { %v1053_v7 = vadd.f32 %v1045_v51, %v1029_v0  ;;  %v1043_v14 = vmul.f32 0.25, %v971_v50  ;;  %v1170_v33 = vadd.f32 %v2152_v63, %v2150_v62  ;;  %v1035_v35 = vadd.f32 %v1027_v32, %v2065_v38 }
  0xf6   : > { %2685 = vst [vmem:[#allocation3_spill] sm:$0xff] %v2154_v1  ;;  %2686 = vst [vmem:[#allocation4_spill] sm:$0xff] %v2156_v4  ;;  %v1461_v18 = vadd.f32 %v2156_v4, %v2154_v1  ;;  %v2166_v0 = vmul.f32 0.75, %v997_v6  ;;  %v2168_v19 = vmul.f32 0.25, %v997_v6  ;;  %v2170_v20 = vmul.f32 0.75, %v1011_v55 }
  0xf7   : > { %v2172_v21 = vmul.f32 0.25, %v1011_v55  ;;  %1178 = vst [vmem:[%s2115_s13] sm:$0xff] %v1170_v33  ;;  %v2176_v22 = vmul.f32 0.75, %v1053_v7  ;;  %v2178_v24 = vmul.f32 0.25, %v1053_v7  ;;  %v995_v25 = vadd.f32 %v2063_v17, %v979_v13 }
  0xf8   : > { %1469 = vst [vmem:[%s2115_s13 + $0x18] sm:$0xff] %v1461_v18  ;;  %v1051_v27 = vadd.f32 %v1043_v14, %v1027_v32  ;;  %v1008_v28 = vmul.f32 0.25, %v532_v56  ;;  %v1032_v34 = vmul.f32 0.75, %v532_v56  ;;  %v1006_v38 = vmul.f32 0.25, %v524_v61  ;;  %v1835_v56 = vpop.f32.mrf.mxu0 }
  0xf9   : > { %v1030_v41 = vmul.f32 0.75, %v524_v61  ;;  %v2181_v47 = vmul.f32 0.75, %v995_v25  ;;  %v2183_v48 = vmul.f32 0.25, %v995_v25  ;;  %v2185_v49 = vmul.f32 0.75, %v1035_v35  ;;  %v968_v50 = vld [vmem:[#allocation2 + $0xe0] sm:$0xff] }
  0xfa   : > { %v2187_v51 = vmul.f32 0.25, %v1035_v35  ;;  %v2189_v55 = vmul.f32 0.75, %v1051_v27  ;;  %v2191_v30 = vmul.f32 0.25, %v1051_v27  ;;  %v1016_v17 = vadd.f32 %v1008_v28, %v2068_v42  ;;  %v976_v61 = vld [vmem:[#allocation2 + $0x62] sm:$0xff] }
  0xfb   : > { %v1040_v32 = vadd.f32 %v1032_v34, %v2070_v43  ;;  %v966_v6 = vld [vmem:[#allocation2 + $0xc0] sm:$0xff]  ;;  %v1014_v7 = vadd.f32 %v1006_v38, %v2072_v44  ;;  %v1038_v13 = vadd.f32 %v1030_v41, %v2074_v45  ;;  %v535_v14 = vadd.f32 %v1827_v15, %v2046_v11 }
  0xfc   : > { %2687 = vst [vmem:[#allocation5_spill] sm:$0xff] %v2191_v30  ;;  %v527_v33 = vadd.f32 %v2046_v11, %v526_v46  ;;  %v984_v18 = vmul.f32 0.25, %v968_v50  ;;  %v1048_v35 = vmul.f32 0.25, %v976_v61  ;;  %v974_v25 = vld [vmem:[#allocation2 + $0x42] sm:$0xff]  ;;  %v2200_v27 = vmul.f32 0.75, %v2102_v5  ;;  %v633_v61 = vpop.f32.mrf.mxu0 }
  0xfd   : > { %v2203_v43 = vmul.f32 0.25, %v2102_v5  ;;  %v2205_v28 = vmul.f32 0.75, %v1016_v17  ;;  %v2207_v30 = vmul.f32 0.25, %v1016_v17  ;;  %v982_v38 = vmul.f32 0.25, %v966_v6  ;;  %911 = vst [vmem:[#allocation2 + $0xf1] sm:$0xff] %v535_v14 }
  0xfe   : > { %v1046_v1 = vmul.f32 0.25, %v974_v25  ;;  %927 = vst [vmem:[#allocation2 + $0x72] sm:$0x80] %v535_v14  ;;  %909 = vst [vmem:[#allocation2 + $0xd1] sm:$0xff] %v527_v33  ;;  %v1000_v45 = vadd.f32 %v2068_v42, %v984_v18  ;;  %v1056_v15 = vadd.f32 %v1048_v35, %v1032_v34  ;;  %v2210_v46 = vmul.f32 0.75, %v1040_v32  ;;  %v1846_v34 = vpop.f32.mrf.mxu1 }
  0xff   : > { %2688 = vst [vmem:[#allocation6_spill] sm:$0xff] %v2205_v28  ;;  %2689 = vst [vmem:[#allocation7_spill] sm:$0xff] %v2207_v30  ;;  %v2212_v50 = vmul.f32 0.25, %v1040_v32  ;;  %v998_v5 = vadd.f32 %v2072_v44, %v982_v38  ;;  %v2215_v28 = vmul.f32 0.75, %v1014_v7  ;;  %v2217_v17 = vmul.f32 0.25, %v1014_v7 }
 0x100   : > { %925 = vst [vmem:[#allocation2 + $0x52] sm:$0x80] %v527_v33  ;;  %2690 = vst [vmem:[#allocation8_spill] sm:$0xff] %v2210_v46  ;;  %v1054_v4 = vadd.f32 %v1046_v1, %v1030_v41  ;;  %v2219_v6 = vmul.f32 0.75, %v1000_v45  ;;  %v2221_v25 = vmul.f32 0.25, %v1000_v45  ;;  %v2223_v30 = vmul.f32 0.75, %v1038_v13 }
 0x101   : > { %2691 = vst [vmem:[#allocation9_spill] sm:$0xff] %v2212_v50  ;;  %2692 = vst [vmem:[#allocation10_spill] sm:$0xff] %v2217_v17  ;;  %v2225_v42 = vmul.f32 0.25, %v1038_v13  ;;  %v2227_v18 = vmul.f32 0.75, %v1056_v15  ;;  %v2229_v32 = vmul.f32 0.25, %v1056_v15  ;;  %v2231_v35 = vmul.f32 0.75, %v998_v5 }
 0x102   : > { %2693 = vst [vmem:[#allocation11_spill] sm:$0xff] %v2219_v6  ;;  %2694 = vst [vmem:[#allocation12_spill] sm:$0xff] %v2221_v25  ;;  %v2233_v44 = vmul.f32 0.25, %v998_v5  ;;  %v1009_v1 = vmul.f32 0.25, %v535_v14  ;;  %v1033_v41 = vmul.f32 0.75, %v535_v14  ;;  %v1007_v7 = vmul.f32 0.25, %v527_v33  ;;  %v1838_v6 = vpop.f32.mrf.mxu0 }
 0x103   : > { %2695 = vst [vmem:[#allocation13_spill] sm:$0xff] %v2223_v30  ;;  %2696 = vst [vmem:[#allocation14_spill] sm:$0xff] %v2225_v42  ;;  %v1031_v38 = vmul.f32 0.75, %v527_v33  ;;  %v642_v45 = vadd.f32 %v1835_v56, %v2046_v11  ;;  %v634_v25 = vadd.f32 %v2046_v11, %v633_v61  ;;  %v873_v13 = vadd.f32 %v1846_v34, %v2046_v11 }
 0x104   : > { %2697 = vst [vmem:[#allocation15_spill] sm:$0xff] %v2227_v18  ;;  %2698 = vst [vmem:[#allocation16_spill] sm:$0xff] %v2229_v32  ;;  %v2239_v50 = vadd.f32 %v1838_v6, %v2046_v11  ;;  %v2241_v15 = vmul.f32 0.75, %v1054_v4  ;;  %v969_v32 = vld [vmem:[#allocation2 + $0xf0] sm:$0xff]  ;;  %v1017_v5 = vadd.f32 %v1009_v1, %v2080_v53  ;;  %v1041_v14 = vadd.f32 %v1033_v41, %v2082_v54 }
 0x105   : > { %2699 = vst [vmem:[#allocation17_spill] sm:$0xff] %v2231_v35  ;;  %2700 = vst [vmem:[#allocation18_spill] sm:$0xff] %v2233_v44  ;;  %v977_v18 = vld [vmem:[#allocation2 + $0x72] sm:$0xff]  ;;  %v1015_v33 = vadd.f32 %v1007_v7, %v2089_v59  ;;  %v985_v42 = vmul.f32 0.25, %v969_v32  ;;  %v1039_v34 = vadd.f32 %v1031_v38, %v2091_v60  ;;  %v2249_v54 = vmul.f32 0.25, %v1054_v4 }
 0x106   : > { %2701 = vst [vmem:[#allocation19_spill] sm:$0xff] %v2241_v15  ;;  %v967_v46 = vld [vmem:[#allocation2 + $0xd0] sm:$0xff]  ;;  %v1049_v56 = vmul.f32 0.25, %v977_v18  ;;  %932 = vst [vmem:[#allocation2 + $0x131] sm:$0xff] %v642_v45  ;;  %v2251_v6 = vmul.f32 0.75, %v1017_v5  ;;  %v2253_v32 = vmul.f32 0.25, %v1017_v5  ;;  %v864_v15 = vpop.f32.mrf.mxu1 }
 0x107   : > { %v975_v30 = vld [vmem:[#allocation2 + $0x52] sm:$0xff]  ;;  %v983_v61 = vmul.f32 0.25, %v967_v46  ;;  %949 = vst [vmem:[#allocation2 + $0x1b0] sm:$0x1] %v642_v45  ;;  %930 = vst [vmem:[#allocation2 + $0x111] sm:$0xff] %v634_v25  ;;  %v2255_v18 = vmul.f32 0.75, %v642_v45  ;;  %v1001_v60 = vadd.f32 %v2080_v53, %v985_v42  ;;  %v646_v42 = vpop.f32.mrf.mxu0 }
 0x108   : > { %947 = vst [vmem:[#allocation2 + $0x190] sm:$0x1] %v634_v25  ;;  %940 = vst [vmem:[#allocation2 + $0x1a1] sm:$0xff] %v873_v13  ;;  %v1057_v46 = vadd.f32 %v1049_v56, %v1033_v41  ;;  %v1047_v7 = vmul.f32 0.25, %v975_v30  ;;  %v2259_v17 = vmul.f32 0.75, %v1041_v14  ;;  %v2261_v44 = vmul.f32 0.25, %v1041_v14 }
 0x109   : > { %956 = vst [vmem:[#allocation2 + $0x122] sm:$0x80] %v873_v13  ;;  %935 = vst [vmem:[#allocation2 + $0x161] sm:$0xff] %v2239_v50  ;;  %v999_v1 = vadd.f32 %v2089_v59, %v983_v61  ;;  %v2263_v35 = vmul.f32 0.75, %v1015_v33  ;;  %v2265_v4 = vmul.f32 0.25, %v1015_v33  ;;  %v2269_v5 = vmul.f32 0.25, %v1001_v60 }
 0x10a   : > { %952 = vst [vmem:[#allocation2 + $0x1e0] sm:$0x1] %v2239_v50  ;;  %2702 = vst [vmem:[#allocation20_spill] sm:$0xff] %v2251_v6  ;;  %v2267_v6 = vmul.f32 0.75, %v1001_v60  ;;  %v2273_v53 = vmul.f32 0.25, %v1039_v34  ;;  %v2275_v59 = vmul.f32 0.75, %v1057_v46  ;;  %v1055_v41 = vadd.f32 %v1047_v7, %v1031_v38  ;;  %v1847_v60 = vpop.f32.mrf.mxu1 }
 0x10b   : > { %2703 = vst [vmem:[#allocation21_spill] sm:$0xff] %v2253_v32  ;;  %2704 = vst [vmem:[#allocation22_spill] sm:$0xff] %v2263_v35  ;;  %v2271_v32 = vmul.f32 0.75, %v1039_v34  ;;  %v2277_v30 = vmul.f32 0.25, %v1057_v46  ;;  %v2279_v14 = vmul.f32 0.75, %v999_v1  ;;  %v2281_v56 = vmul.f32 0.25, %v999_v1 }
 0x10c   : > { %2705 = vst [vmem:[#allocation23_spill] sm:$0xff] %v2265_v4  ;;  %2706 = vst [vmem:[#allocation24_spill] sm:$0xff] %v2267_v6  ;;  %v2283_v33 = vmul.f32 0.25, %v642_v45  ;;  %v1100_v61 = vmul.f32 0.25, %v873_v13  ;;  %v1124_v4 = vmul.f32 0.75, %v873_v13  ;;  %v2285_v35 = vmul.f32 0.75, %v1055_v41 }
 0x10d   : > { %2707 = vst [vmem:[#allocation25_spill] sm:$0xff] %v2269_v5  ;;  %2708 = vst [vmem:[#allocation26_spill] sm:$0xff] %v2271_v32  ;;  %v2287_v32 = vmul.f32 0.25, %v1055_v41  ;;  %v2289_v34 = vmul.f32 0.75, %v634_v25  ;;  %v865_v13 = vadd.f32 %v2046_v11, %v864_v15  ;;  %v2300_v41 = vadd.f32 %v1847_v60, %v2046_v11 }
 0x10e   : > { %2709 = vst [vmem:[#allocation27_spill] sm:$0xff] %v2273_v53  ;;  %2710 = vst [vmem:[#allocation28_spill] sm:$0xff] %v2275_v59  ;;  %v2291_v53 = vmul.f32 0.25, %v634_v25  ;;  %v1108_v7 = vadd.f32 %v1100_v61, %v2124_v23  ;;  %v1132_v1 = vadd.f32 %v1124_v4, %v2133_v36 }
 0x10f   : > { %2711 = vst [vmem:[#allocation29_spill] sm:$0xff] %v2277_v30  ;;  %2712 = vst [vmem:[#allocation30_spill] sm:$0xff] %v2279_v14  ;;  %v1060_v46 = vld [vmem:[#allocation2 + $0x1a0] sm:$0xff]  ;;  %v2297_v14 = vadd.f32 %v2046_v11, %v646_v42  ;;  %v2306_v15 = vmul.f32 0.75, %v865_v13 }
 0x110   : > { %2713 = vst [vmem:[#allocation31_spill] sm:$0xff] %v2281_v56  ;;  %2714 = vst [vmem:[#allocation32_spill] sm:$0xff] %v2285_v35  ;;  %v1068_v30 = vld [vmem:[#allocation2 + $0x122] sm:$0xff]  ;;  %v1076_v38 = vmul.f32 0.25, %v1060_v46  ;;  %v1839_v56 = vpop.f32.mrf.mxu0  ;;  %v1256_v35 = vmul.f32 0.25, %v1108_v7  ;;  %v1311_v61 = vmul.f32 0.75, %v1108_v7 }
 0x111   : > { %2715 = vst [vmem:[#allocation33_spill] sm:$0xff] %v2287_v32  ;;  %v1140_v45 = vmul.f32 0.25, %v1068_v30  ;;  %v2303_v25 = vadd.f32 %v1839_v56, %v2046_v11  ;;  %v1352_v59 = vmul.f32 0.25, %v1132_v1  ;;  %v1407_v36 = vmul.f32 0.75, %v1132_v1  ;;  %938 = vst [vmem:[#allocation2 + $0x181] sm:$0xff] %v865_v13 }
 0x112   : > { %v1092_v32 = vadd.f32 %v2124_v23, %v1076_v38  ;;  %954 = vst [vmem:[#allocation2 + $0x102] sm:$0x80] %v865_v13  ;;  %v1098_v30 = vmul.f32 0.25, %v865_v13  ;;  %933 = vst [vmem:[#allocation2 + $0x141] sm:$0xff] %v2297_v14  ;;  %v1272_v42 = vadd.f32 %v2129_v29, %v1256_v35  ;;  %v1288_v56 = vadd.f32 %v2085_v57, %v1256_v35 }
 0x113   : > { %v1148_v46 = vadd.f32 %v1140_v45, %v1124_v4  ;;  %950 = vst [vmem:[#allocation2 + $0x1c0] sm:$0x1] %v2297_v14  ;;  %941 = vst [vmem:[#allocation2 + $0x1b1] sm:$0xff] %v2300_v41  ;;  %v1319_v60 = vadd.f32 %v1311_v61, %v2087_v58  ;;  %v1335_v38 = vadd.f32 %v1311_v61, %v2131_v31 }
 0x114   : > { %957 = vst [vmem:[#allocation2 + $0x132] sm:$0x80] %v2300_v41  ;;  %936 = vst [vmem:[#allocation2 + $0x171] sm:$0xff] %v2303_v25  ;;  %v1157_v23 = vmul.f32 0.25, %v1092_v32  ;;  %v1213_v4 = vmul.f32 0.75, %v1092_v32  ;;  %v1368_v7 = vadd.f32 %v2139_v26, %v1352_v59  ;;  %v1384_v1 = vadd.f32 %v2096_v2, %v1352_v59 }
 0x115   : > { %953 = vst [vmem:[#allocation2 + $0x1f0] sm:$0x1] %v2303_v25  ;;  %1280 = vst [vmem:[%s2115_s13 + $0x68] sm:$0xff] %v1272_v42  ;;  %v1415_v59 = vadd.f32 %v1407_v36, %v2098_v3  ;;  %v1431_v61 = vadd.f32 %v1407_v36, %v2141_v40  ;;  %v1448_v5 = vmul.f32 0.25, %v1148_v46  ;;  %v1503_v6 = vmul.f32 0.75, %v1148_v46  ;;  %v2345_v36 = vpop.f32.mrf.mxu1 }
 0x116   : > { %v1173_v45 = vadd.f32 %v2166_v0, %v1157_v23  ;;  %v1189_v32 = vadd.f32 %v2135_v37, %v1157_v23  ;;  %v1221_v13 = vadd.f32 %v1213_v4, %v2137_v39  ;;  %v1238_v35 = vadd.f32 %v1213_v4, %v2168_v19  ;;  %1707 = vst [vmem:[%s2115_s13 + $0x148] sm:$0xff] %v1288_v56 }
 0x117   : > { %1715 = vst [vmem:[%s2115_s13 + $0x248] sm:$0xff] %v1319_v60  ;;  %1723 = vst [vmem:[%s2115_s13 + $0x348] sm:$0xff] %v1335_v38  ;;  %v2337_v23 = vmul.f32 0.75, %v2239_v50  ;;  %v2340_v4 = vmul.f32 0.25, %v2239_v50  ;;  %v1106_v42 = vadd.f32 %v1098_v30, %v2200_v27  ;;  %v1130_v56 = vadd.f32 %v2306_v15, %v2203_v43 }
 0x118   : > { %1376 = vst [vmem:[%s2115_s13 + $0x70] sm:$0xff] %v1368_v7  ;;  %1731 = vst [vmem:[%s2115_s13 + $0x150] sm:$0xff] %v1384_v1  ;;  %v1464_v46 = vadd.f32 %v2176_v22, %v1448_v5  ;;  %v1480_v60 = vadd.f32 %v2145_v52, %v1448_v5  ;;  %v1511_v50 = vadd.f32 %v1503_v6, %v2159_v16  ;;  %v1058_v7 = vld [vmem:[#allocation2 + $0x180] sm:$0xff] }
 0x119   : > { %1181 = vst [vmem:[%s2115_s13 + $0x60] sm:$0xff] %v1173_v45  ;;  %1683 = vst [vmem:[%s2115_s13 + $0x140] sm:$0xff] %v1189_v32  ;;  %v1527_v38 = vadd.f32 %v1503_v6, %v2178_v24  ;;  %v1066_v30 = vld [vmem:[#allocation2 + $0x102] sm:$0xff]  ;;  %v1254_v1 = vmul.f32 0.25, %v1106_v42  ;;  %v1309_v45 = vmul.f32 0.75, %v1106_v42  ;;  %v1350_v32 = vmul.f32 0.25, %v1130_v56 }
 0x11a   : > { %1691 = vst [vmem:[%s2115_s13 + $0x240] sm:$0xff] %v1221_v13  ;;  %1699 = vst [vmem:[%s2115_s13 + $0x340] sm:$0xff] %v1238_v35  ;;  %v1405_v43 = vmul.f32 0.75, %v1130_v56  ;;  %v1074_v13 = vmul.f32 0.25, %v1058_v7  ;;  %v1138_v35 = vmul.f32 0.25, %v1066_v30  ;;  %v1061_v5 = vld [vmem:[#allocation2 + $0x1b0] sm:$0xff] }
 0x11b   : > { %1739 = vst [vmem:[%s2115_s13 + $0x250] sm:$0xff] %v1415_v59  ;;  %1747 = vst [vmem:[%s2115_s13 + $0x350] sm:$0xff] %v1431_v61  ;;  %v1101_v59 = vmul.f32 0.25, %v2300_v41  ;;  %v1125_v6 = vmul.f32 0.75, %v2300_v41  ;;  %v1270_v61 = vadd.f32 %v2170_v20, %v1254_v1  ;;  %v1286_v42 = vadd.f32 %v2106_v9, %v1254_v1  ;;  %v1069_v30 = vld [vmem:[#allocation2 + $0x132] sm:$0xff] }
 0x11c   : > { %1472 = vst [vmem:[%s2115_s13 + $0x78] sm:$0xff] %v1464_v46  ;;  %1755 = vst [vmem:[%s2115_s13 + $0x158] sm:$0xff] %v1480_v60  ;;  %v1317_v56 = vadd.f32 %v1309_v45, %v2104_v8  ;;  %v1333_v46 = vadd.f32 %v1309_v45, %v2172_v21  ;;  %v2363_v60 = vpop.f32.mrf.mxu1  ;;  %v1366_v7 = vadd.f32 %v2185_v49, %v1350_v32  ;;  %v1077_v1 = vmul.f32 0.25, %v1061_v5 }
 0x11d   : > { %1763 = vst [vmem:[%s2115_s13 + $0x258] sm:$0xff] %v1511_v50  ;;  %1771 = vst [vmem:[%s2115_s13 + $0x358] sm:$0xff] %v1527_v38  ;;  %v1090_v50 = vadd.f32 %v2200_v27, %v1074_v13  ;;  %v1146_v38 = vadd.f32 %v1138_v35, %v2306_v15  ;;  %v1382_v41 = vadd.f32 %v2110_v12, %v1350_v32 }
 0x11e   : > { %1278 = vst [vmem:[%s2115_s13 + $0x28] sm:$0xff] %v1270_v61  ;;  %1705 = vst [vmem:[%s2115_s13 + $0x108] sm:$0xff] %v1286_v42  ;;  %v1413_v8 = vadd.f32 %v1405_v43, %v2108_v10  ;;  %v1429_v9 = vadd.f32 %v1405_v43, %v2187_v51  ;;  %v1109_v27 = vadd.f32 %v1101_v59, %v2255_v18  ;;  %v1141_v43 = vmul.f32 0.25, %v1069_v30  ;;  %v2382_v5 = vpop.f32.mrf.mxu1 }
 0x11f   : > { %1713 = vst [vmem:[%s2115_s13 + $0x208] sm:$0xff] %v1317_v56  ;;  %1721 = vst [vmem:[%s2115_s13 + $0x308] sm:$0xff] %v1333_v46  ;;  %v1155_v45 = vmul.f32 0.25, %v1090_v50  ;;  %v1211_v15 = vmul.f32 0.75, %v1090_v50  ;;  %v1446_v13 = vmul.f32 0.25, %v1146_v38  ;;  %v1501_v12 = vmul.f32 0.75, %v1146_v38 }
 0x120   : > { %1374 = vst [vmem:[%s2115_s13 + $0x30] sm:$0xff] %v1366_v7  ;;  %1729 = vst [vmem:[%s2115_s13 + $0x110] sm:$0xff] %v1382_v41  ;;  %v1093_v32 = vadd.f32 %v2255_v18, %v1077_v1  ;;  %v1133_v10 = vadd.f32 %v1125_v6, %v2283_v33  ;;  %v1257_v35 = vmul.f32 0.25, %v1109_v27  ;;  %v2716_v46 = vld [vmem:[#allocation4_spill] sm:$0xff]  ;;  %v2717_v50 = vld [vmem:[#allocation3_spill] sm:$0xff]  ;;  %v1312_v1 = vmul.f32 0.75, %v1109_v27 }
 0x121   : > { %1737 = vst [vmem:[%s2115_s13 + $0x210] sm:$0xff] %v1413_v8  ;;  %1745 = vst [vmem:[%s2115_s13 + $0x310] sm:$0xff] %v1429_v9  ;;  %v1171_v59 = vadd.f32 %v2181_v47, %v1155_v45  ;;  %v1187_v61 = vadd.f32 %v2152_v63, %v1155_v45  ;;  %v1219_v42 = vadd.f32 %v1211_v15, %v2150_v62  ;;  %v2718_v7 = vld [vmem:[#allocation5_spill] sm:$0xff]  ;;  %v2721_v27 = vld [vmem:[#allocation10_spill] sm:$0xff] }
 0x122   : > { %v1236_v56 = vadd.f32 %v1211_v15, %v2183_v48  ;;  %v1462_v18 = vadd.f32 %v2189_v55, %v1446_v13  ;;  %v1478_v33 = vadd.f32 %v2716_v46, %v1446_v13  ;;  %v1509_v38 = vadd.f32 %v1501_v12, %v2717_v50  ;;  %v2719_v13 = vld [vmem:[#allocation17_spill] sm:$0xff] }
 0x123   : > { %v1525_v41 = vadd.f32 %v1501_v12, %v2718_v7  ;;  %1179 = vst [vmem:[%s2115_s13 + $0x20] sm:$0xff] %v1171_v59  ;;  %1681 = vst [vmem:[%s2115_s13 + $0x100] sm:$0xff] %v1187_v61  ;;  %v1149_v63 = vadd.f32 %v1141_v43, %v1125_v6  ;;  %v1158_v30 = vmul.f32 0.25, %v1093_v32  ;;  %v1214_v62 = vmul.f32 0.75, %v1093_v32  ;;  %v1851_v6 = vpop.f32.mrf.mxu1  ;;  %v2720_v59 = vld [vmem:[#allocation18_spill] sm:$0xff] }
 0x124   : > { %1689 = vst [vmem:[%s2115_s13 + $0x200] sm:$0xff] %v1219_v42  ;;  %1697 = vst [vmem:[%s2115_s13 + $0x300] sm:$0xff] %v1236_v56  ;;  %v1273_v8 = vadd.f32 %v2215_v28, %v1257_v35  ;;  %v1289_v9 = vadd.f32 %v2129_v29, %v1257_v35  ;;  %v1353_v45 = vmul.f32 0.25, %v1133_v10  ;;  %v1408_v15 = vmul.f32 0.75, %v1133_v10  ;;  %v649_v42 = vpop.f32.mrf.mxu0  ;;  %v2722_v35 = vld [vmem:[#allocation13_spill] sm:$0xff] }
 0x125   : > { %1470 = vst [vmem:[%s2115_s13 + $0x38] sm:$0xff] %v1462_v18  ;;  %1753 = vst [vmem:[%s2115_s13 + $0x118] sm:$0xff] %v1478_v33  ;;  %v1174_v12 = vadd.f32 %v2719_v13, %v1158_v30  ;;  %v1190_v32 = vadd.f32 %v2166_v0, %v1158_v30  ;;  %v1222_v43 = vadd.f32 %v1214_v62, %v2168_v19  ;;  %v2723_v19 = vld [vmem:[#allocation14_spill] sm:$0xff]  ;;  %v1449_v33 = vmul.f32 0.25, %v1149_v63 }
 0x126   : > { %1761 = vst [vmem:[%s2115_s13 + $0x218] sm:$0xff] %v1509_v38  ;;  %1769 = vst [vmem:[%s2115_s13 + $0x318] sm:$0xff] %v1525_v41  ;;  %v1239_v61 = vadd.f32 %v1214_v62, %v2720_v59  ;;  %v1320_v29 = vadd.f32 %v1312_v1, %v2131_v31  ;;  %v1336_v10 = vadd.f32 %v1312_v1, %v2721_v27  ;;  %v1504_v31 = vmul.f32 0.75, %v1149_v63  ;;  %v2724_v63 = vld [vmem:[#allocation19_spill] sm:$0xff] }
 0x127   : > { %1281 = vst [vmem:[%s2115_s13 + $0x88] sm:$0xff] %v1273_v8  ;;  %1708 = vst [vmem:[%s2115_s13 + $0x168] sm:$0xff] %v1289_v9  ;;  %v1369_v56 = vadd.f32 %v2722_v35, %v1353_v45  ;;  %v1385_v18 = vadd.f32 %v2139_v26, %v1353_v45  ;;  %v1416_v0 = vadd.f32 %v1408_v15, %v2141_v40  ;;  %v2419_v50 = vmul.f32 0.75, %v2297_v14  ;;  %v883_v40 = vpop.f32.mrf.mxu1 }
 0x128   : > { %1182 = vst [vmem:[%s2115_s13 + $0x80] sm:$0xff] %v1174_v12  ;;  %1684 = vst [vmem:[%s2115_s13 + $0x160] sm:$0xff] %v1190_v32  ;;  %v1432_v46 = vadd.f32 %v1408_v15, %v2723_v19  ;;  %v1118_v38 = vmul.f32 0.25, %v2297_v14  ;;  %v868_v26 = vadd.f32 %v2046_v11, %v2345_v36  ;;  %v650_v41 = vadd.f32 %v2046_v11, %v649_v42 }
 0x129   : > { %1692 = vst [vmem:[%s2115_s13 + $0x260] sm:$0xff] %v1222_v43  ;;  %1700 = vst [vmem:[%s2115_s13 + $0x360] sm:$0xff] %v1239_v61  ;;  %v1465_v30 = vadd.f32 %v2724_v63, %v1449_v33  ;;  %v1481_v14 = vadd.f32 %v2176_v22, %v1449_v33  ;;  %v1512_v62 = vadd.f32 %v1504_v31, %v2178_v24  ;;  %v2436_v9 = vmul.f32 0.75, %v2303_v25 }
 0x12a   : > { %1716 = vst [vmem:[%s2115_s13 + $0x268] sm:$0xff] %v1320_v29  ;;  %1724 = vst [vmem:[%s2115_s13 + $0x368] sm:$0xff] %v1336_v10  ;;  %v1528_v8 = vadd.f32 %v1504_v31, %v2249_v54  ;;  %v2439_v36 = vmul.f32 0.25, %v2303_v25  ;;  %v1099_v1 = vmul.f32 0.25, %v868_v26  ;;  %v1123_v45 = vmul.f32 0.75, %v868_v26 }
 0x12b   : > { %1377 = vst [vmem:[%s2115_s13 + $0x90] sm:$0xff] %v1369_v56  ;;  %1732 = vst [vmem:[%s2115_s13 + $0x170] sm:$0xff] %v1385_v18  ;;  %v889_v22 = vadd.f32 %v2363_v60, %v2046_v11  ;;  %v881_v24 = vadd.f32 %v2046_v11, %v2382_v5  ;;  %v2450_v15 = vadd.f32 %v1851_v6, %v2046_v11  ;;  %v2457_v43 = vmul.f32 0.75, %v650_v41 }
 0x12c   : > { %1740 = vst [vmem:[%s2115_s13 + $0x270] sm:$0xff] %v1416_v0  ;;  %1748 = vst [vmem:[%s2115_s13 + $0x370] sm:$0xff] %v1432_v46  ;;  %v2453_v25 = vadd.f32 %v2046_v11, %v883_v40  ;;  %v1107_v12 = vadd.f32 %v1099_v1, %v2289_v34  ;;  %v1131_v32 = vadd.f32 %v1123_v45, %v2291_v53  ;;  %v2459_v61 = vmul.f32 0.25, %v650_v41 }
 0x12d   : > { %939 = vst [vmem:[#allocation2 + $0x191] sm:$0xff] %v868_v26  ;;  %955 = vst [vmem:[#allocation2 + $0x112] sm:$0x80] %v868_v26  ;;  %v1104_v60 = vmul.f32 0.25, %v889_v22  ;;  %v1128_v42 = vmul.f32 0.75, %v889_v22  ;;  %v1102_v5 = vmul.f32 0.25, %v881_v24 }
 0x12e   : > { %934 = vst [vmem:[#allocation2 + $0x151] sm:$0xff] %v650_v41  ;;  %951 = vst [vmem:[#allocation2 + $0x1d0] sm:$0x1] %v650_v41  ;;  %v2461_v6 = vmul.f32 0.75, %v881_v24  ;;  %v1255_v11 = vmul.f32 0.25, %v1107_v12  ;;  %v1310_v53 = vmul.f32 0.75, %v1107_v12 }
 0x12f   : > { %1473 = vst [vmem:[%s2115_s13 + $0x98] sm:$0xff] %v1465_v30  ;;  %1756 = vst [vmem:[%s2115_s13 + $0x178] sm:$0xff] %v1481_v14  ;;  %v1351_v29 = vmul.f32 0.25, %v1131_v32  ;;  %v1406_v10 = vmul.f32 0.75, %v1131_v32  ;;  %v1112_v56 = vadd.f32 %v1104_v60, %v2337_v23  ;;  %v1136_v18 = vadd.f32 %v1128_v42, %v2340_v4  ;;  %v2725_v12 = vld [vmem:[#allocation20_spill] sm:$0xff]  ;;  %v2726_v60 = vld [vmem:[#allocation6_spill] sm:$0xff] }
 0x130   : > { %1764 = vst [vmem:[%s2115_s13 + $0x278] sm:$0xff] %v1512_v62  ;;  %1772 = vst [vmem:[%s2115_s13 + $0x378] sm:$0xff] %v1528_v8  ;;  %v1110_v0 = vadd.f32 %v1102_v5, %v2419_v50  ;;  %v2471_v46 = vadd.f32 %v2461_v6, %v1118_v38  ;;  %v1271_v33 = vadd.f32 %v2085_v57, %v1255_v11 }
 0x131   : > { %944 = vst [vmem:[#allocation2 + $0x1e1] sm:$0xff] %v889_v22  ;;  %960 = vst [vmem:[#allocation2 + $0x162] sm:$0x80] %v889_v22  ;;  %v1287_v31 = vadd.f32 %v2170_v20, %v1255_v11  ;;  %v1318_v26 = vadd.f32 %v1310_v53, %v2172_v21  ;;  %v1334_v41 = vadd.f32 %v1310_v53, %v2087_v58  ;;  %v1260_v58 = vmul.f32 0.25, %v1112_v56 }
 0x132   : > { %942 = vst [vmem:[#allocation2 + $0x1c1] sm:$0xff] %v881_v24  ;;  %958 = vst [vmem:[#allocation2 + $0x142] sm:$0x80] %v881_v24  ;;  %v1367_v30 = vadd.f32 %v2096_v2, %v1351_v29  ;;  %v1383_v38 = vadd.f32 %v2185_v49, %v1351_v29  ;;  %v1414_v14 = vadd.f32 %v1406_v10, %v2187_v51  ;;  %v1315_v21 = vmul.f32 0.75, %v1112_v56  ;;  %v2727_v29 = vld [vmem:[#allocation7_spill] sm:$0xff]  ;;  %v2728_v56 = vld [vmem:[#allocation21_spill] sm:$0xff] }
 0x133   : > { %945 = vst [vmem:[#allocation2 + $0x1f1] sm:$0xff] %v2450_v15  ;;  %961 = vst [vmem:[#allocation2 + $0x172] sm:$0x80] %v2450_v15  ;;  %v1430_v57 = vadd.f32 %v1406_v10, %v2098_v3  ;;  %v1356_v8 = vmul.f32 0.25, %v1136_v18  ;;  %v1411_v2 = vmul.f32 0.75, %v1136_v18  ;;  %v2489_v1 = vmul.f32 0.25, %v1110_v0 }
 0x134   : > { %943 = vst [vmem:[#allocation2 + $0x1d1] sm:$0xff] %v2453_v25  ;;  %959 = vst [vmem:[#allocation2 + $0x152] sm:$0x80] %v2453_v25  ;;  %v1059_v40 = vld [vmem:[#allocation2 + $0x190] sm:$0xff]  ;;  %v2491_v49 = vmul.f32 0.75, %v1110_v0  ;;  %v1276_v32 = vadd.f32 %v2725_v12, %v1260_v58  ;;  %v1292_v5 = vadd.f32 %v2726_v60, %v1260_v58  ;;  %v1323_v10 = vadd.f32 %v1315_v21, %v2727_v29 }
 0x135   : > { %v1067_v4 = vld [vmem:[#allocation2 + $0x112] sm:$0xff]  ;;  %v1075_v62 = vmul.f32 0.25, %v1059_v40  ;;  %1279 = vst [vmem:[%s2115_s13 + $0x48] sm:$0xff] %v1271_v33  ;;  %1706 = vst [vmem:[%s2115_s13 + $0x128] sm:$0xff] %v1287_v31  ;;  %v1339_v18 = vadd.f32 %v1315_v21, %v2728_v56  ;;  %v2729_v40 = vld [vmem:[#allocation8_spill] sm:$0xff]  ;;  %v1435_v21 = vadd.f32 %v1411_v2, %v2261_v44 }
 0x136   : > { %v1139_v20 = vmul.f32 0.25, %v1067_v4  ;;  %1714 = vst [vmem:[%s2115_s13 + $0x228] sm:$0xff] %v1318_v26  ;;  %1722 = vst [vmem:[%s2115_s13 + $0x328] sm:$0xff] %v1334_v41  ;;  %v1372_v41 = vadd.f32 %v2259_v17, %v1356_v8  ;;  %v1388_v4 = vadd.f32 %v2729_v40, %v1356_v8 }
 0x137   : > { %1375 = vst [vmem:[%s2115_s13 + $0x50] sm:$0xff] %v1367_v30  ;;  %1730 = vst [vmem:[%s2115_s13 + $0x130] sm:$0xff] %v1383_v38  ;;  %v1091_v3 = vadd.f32 %v2289_v34, %v1075_v62 }
 0x138   : > { %1738 = vst [vmem:[%s2115_s13 + $0x230] sm:$0xff] %v1414_v14  ;;  %1746 = vst [vmem:[%s2115_s13 + $0x330] sm:$0xff] %v1430_v57  ;;  %v1147_v51 = vadd.f32 %v1139_v20, %v1123_v45  ;;  %v1064_v22 = vld [vmem:[#allocation2 + $0x1e0] sm:$0xff] }
 0x139   : > { %v1072_v24 = vld [vmem:[#allocation2 + $0x162] sm:$0xff]  ;;  %v1080_v11 = vmul.f32 0.25, %v1064_v22  ;;  %v1156_v0 = vmul.f32 0.25, %v1091_v3  ;;  %v1212_v33 = vmul.f32 0.75, %v1091_v3  ;;  %1284 = vst [vmem:[%s2115_s13 + $0xe8] sm:$0xff] %v1276_v32  ;;  %1711 = vst [vmem:[%s2115_s13 + $0x1c8] sm:$0xff] %v1292_v5 }
 0x13a   : > { %v1144_v53 = vmul.f32 0.25, %v1072_v24  ;;  %v1447_v31 = vmul.f32 0.25, %v1147_v51  ;;  %v1502_v26 = vmul.f32 0.75, %v1147_v51  ;;  %1719 = vst [vmem:[%s2115_s13 + $0x2c8] sm:$0xff] %v1323_v10  ;;  %1727 = vst [vmem:[%s2115_s13 + $0x3c8] sm:$0xff] %v1339_v18  ;;  %v1070_v57 = vld [vmem:[#allocation2 + $0x142] sm:$0xff] }
 0x13b   : > { %v1096_v34 = vadd.f32 %v2337_v23, %v1080_v11  ;;  %v1172_v30 = vadd.f32 %v2135_v37, %v1156_v0  ;;  %v1188_v38 = vadd.f32 %v2181_v47, %v1156_v0  ;;  %v1220_v14 = vadd.f32 %v1212_v33, %v2183_v48  ;;  %1380 = vst [vmem:[%s2115_s13 + $0xf0] sm:$0xff] %v1372_v41  ;;  %v2730_v48 = vld [vmem:[#allocation9_spill] sm:$0xff]  ;;  %v2731_v3 = vld [vmem:[#allocation24_spill] sm:$0xff]  ;;  %v2732_v22 = vld [vmem:[#allocation11_spill] sm:$0xff] }
 0x13c   : > { %v1152_v45 = vadd.f32 %v1144_v53, %v1128_v42  ;;  %v1237_v23 = vadd.f32 %v1212_v33, %v2137_v39  ;;  %v1062_v42 = vld [vmem:[#allocation2 + $0x1c0] sm:$0xff]  ;;  %v1463_v62 = vadd.f32 %v2145_v52, %v1447_v31  ;;  %v1479_v20 = vadd.f32 %v2189_v55, %v1447_v31  ;;  %1735 = vst [vmem:[%s2115_s13 + $0x1d0] sm:$0xff] %v1388_v4  ;;  %v2733_v32 = vld [vmem:[#allocation12_spill] sm:$0xff]  ;;  %v2734_v11 = vld [vmem:[#allocation25_spill] sm:$0xff] }
 0x13d   : > { %v1510_v58 = vadd.f32 %v1502_v26, %v2718_v7  ;;  %v1526_v37 = vadd.f32 %v1502_v26, %v2159_v16  ;;  %1180 = vst [vmem:[%s2115_s13 + $0x40] sm:$0xff] %v1172_v30  ;;  %1682 = vst [vmem:[%s2115_s13 + $0x120] sm:$0xff] %v1188_v38  ;;  %v1161_v39 = vmul.f32 0.25, %v1096_v34  ;;  %v1217_v47 = vmul.f32 0.75, %v1096_v34  ;;  %v2735_v53 = vld [vmem:[#allocation28_spill] sm:$0xff]  ;;  %v2736_v18 = vld [vmem:[#allocation15_spill] sm:$0xff] }
 0x13e   : > { %1690 = vst [vmem:[%s2115_s13 + $0x220] sm:$0xff] %v1220_v14  ;;  %1698 = vst [vmem:[%s2115_s13 + $0x320] sm:$0xff] %v1237_v23  ;;  %v1419_v52 = vadd.f32 %v1411_v2, %v2730_v48  ;;  %v1452_v16 = vmul.f32 0.25, %v1152_v45  ;;  %v1507_v55 = vmul.f32 0.75, %v1152_v45  ;;  %v1078_v7 = vmul.f32 0.25, %v1062_v42  ;;  %v2737_v33 = vld [vmem:[#allocation16_spill] sm:$0xff] }
 0x13f   : > { %1471 = vst [vmem:[%s2115_s13 + $0x58] sm:$0xff] %v1463_v62  ;;  %1754 = vst [vmem:[%s2115_s13 + $0x138] sm:$0xff] %v1479_v20  ;;  %v1142_v8 = vmul.f32 0.25, %v1070_v57  ;;  %v1177_v51 = vadd.f32 %v2731_v3, %v1161_v39  ;;  %v1193_v24 = vadd.f32 %v2732_v22, %v1161_v39  ;;  %v1225_v5 = vadd.f32 %v1217_v47, %v2733_v32  ;;  %v2738_v26 = vld [vmem:[#allocation29_spill] sm:$0xff]  ;;  %v2739_v4 = vld [vmem:[#allocation22_spill] sm:$0xff] }
 0x140   : > { %1762 = vst [vmem:[%s2115_s13 + $0x238] sm:$0xff] %v1510_v58  ;;  %1770 = vst [vmem:[%s2115_s13 + $0x338] sm:$0xff] %v1526_v37  ;;  %v1242_v2 = vadd.f32 %v1217_v47, %v2734_v11  ;;  %v1468_v10 = vadd.f32 %v2735_v53, %v1452_v16  ;;  %v1484_v0 = vadd.f32 %v2736_v18, %v1452_v16  ;;  %v2740_v23 = vld [vmem:[#allocation23_spill] sm:$0xff]  ;;  %v1409_v42 = vmul.f32 0.75, %v2471_v46  ;;  %v2741_v20 = vld [vmem:[#allocation26_spill] sm:$0xff] }
 0x141   : > { %1743 = vst [vmem:[%s2115_s13 + $0x2d0] sm:$0xff] %v1419_v52  ;;  %1751 = vst [vmem:[%s2115_s13 + $0x3d0] sm:$0xff] %v1435_v21  ;;  %v1515_v31 = vadd.f32 %v1507_v55, %v2737_v33  ;;  %v1531_v34 = vadd.f32 %v1507_v55, %v2738_v26  ;;  %v1094_v45 = vadd.f32 %v2419_v50, %v1078_v7  ;;  %v2742_v37 = vld [vmem:[#allocation27_spill] sm:$0xff]  ;;  %v1065_v39 = vld [vmem:[#allocation2 + $0x1f0] sm:$0xff] }
 0x142   : > { %1185 = vst [vmem:[%s2115_s13 + $0xe0] sm:$0xff] %v1177_v51  ;;  %1687 = vst [vmem:[%s2115_s13 + $0x1c0] sm:$0xff] %v1193_v24  ;;  %v1150_v41 = vadd.f32 %v1142_v8, %v2461_v6  ;;  %v1274_v30 = vadd.f32 %v2739_v4, %v2489_v1  ;;  %v1290_v38 = vadd.f32 %v2215_v28, %v2489_v1  ;;  %v1354_v6 = vmul.f32 0.25, %v2471_v46  ;;  %v1073_v47 = vld [vmem:[#allocation2 + $0x172] sm:$0xff]  ;;  %v2744_v7 = vld [vmem:[#allocation31_spill] sm:$0xff] }
 0x143   : > { %1695 = vst [vmem:[%s2115_s13 + $0x2c0] sm:$0xff] %v1225_v5  ;;  %1703 = vst [vmem:[%s2115_s13 + $0x3c0] sm:$0xff] %v1242_v2  ;;  %v1321_v14 = vadd.f32 %v2491_v49, %v2721_v27  ;;  %v1337_v50 = vadd.f32 %v2491_v49, %v2740_v23  ;;  %v1159_v57 = vmul.f32 0.25, %v1094_v45  ;;  %v1215_v62 = vmul.f32 0.75, %v1094_v45  ;;  %v2743_v52 = vld [vmem:[#allocation30_spill] sm:$0xff]  ;;  %v1063_v51 = vld [vmem:[#allocation2 + $0x1d0] sm:$0xff] }
 0x144   : > { %1476 = vst [vmem:[%s2115_s13 + $0xf8] sm:$0xff] %v1468_v10  ;;  %1759 = vst [vmem:[%s2115_s13 + $0x1d8] sm:$0xff] %v1484_v0  ;;  %v1450_v28 = vmul.f32 0.25, %v1150_v41  ;;  %v1505_v1 = vmul.f32 0.75, %v1150_v41  ;;  %v1370_v27 = vadd.f32 %v2741_v20, %v1354_v6  ;;  %v1386_v49 = vadd.f32 %v2722_v35, %v1354_v6  ;;  %v1071_v35 = vld [vmem:[#allocation2 + $0x152] sm:$0xff] }
 0x145   : > { %1767 = vst [vmem:[%s2115_s13 + $0x2d8] sm:$0xff] %v1515_v31  ;;  %1775 = vst [vmem:[%s2115_s13 + $0x3d8] sm:$0xff] %v1531_v34  ;;  %v1417_v58 = vadd.f32 %v1409_v42, %v2723_v19  ;;  %v1433_v46 = vadd.f32 %v1409_v42, %v2742_v37  ;;  %v1175_v21 = vadd.f32 %v2743_v52, %v1159_v57  ;;  %v2745_v19 = vld [vmem:[#allocation32_spill] sm:$0xff]  ;;  %v2746_v2 = vld [vmem:[#allocation33_spill] sm:$0xff]  ;;  %v1081_v10 = vmul.f32 0.25, %v1065_v39 }
 0x146   : > { %1282 = vst [vmem:[%s2115_s13 + $0xa8] sm:$0xff] %v1274_v30  ;;  %1709 = vst [vmem:[%s2115_s13 + $0x188] sm:$0xff] %v1290_v38  ;;  %v1191_v16 = vadd.f32 %v2719_v13, %v1159_v57  ;;  %v1223_v55 = vadd.f32 %v1215_v62, %v2720_v59  ;;  %v1240_v8 = vadd.f32 %v1215_v62, %v2744_v7  ;;  %v1105_v0 = vmul.f32 0.25, %v2450_v15 }
 0x147   : > { %1717 = vst [vmem:[%s2115_s13 + $0x288] sm:$0xff] %v1321_v14  ;;  %1725 = vst [vmem:[%s2115_s13 + $0x388] sm:$0xff] %v1337_v50  ;;  %v1466_v24 = vadd.f32 %v2745_v19, %v1450_v28  ;;  %v1482_v5 = vadd.f32 %v2724_v63, %v1450_v28  ;;  %v1513_v13 = vadd.f32 %v1505_v1, %v2249_v54  ;;  %v1129_v31 = vmul.f32 0.75, %v2450_v15 }
 0x148   : > { %1378 = vst [vmem:[%s2115_s13 + $0xb0] sm:$0xff] %v1370_v27  ;;  %1733 = vst [vmem:[%s2115_s13 + $0x190] sm:$0xff] %v1386_v49  ;;  %v1529_v59 = vadd.f32 %v1505_v1, %v2746_v2  ;;  %v1145_v34 = vmul.f32 0.25, %v1073_v47  ;;  %v1079_v45 = vmul.f32 0.25, %v1063_v51  ;;  %v1103_v63 = vmul.f32 0.25, %v2453_v25 }
 0x149   : > { %1741 = vst [vmem:[%s2115_s13 + $0x290] sm:$0xff] %v1417_v58  ;;  %1749 = vst [vmem:[%s2115_s13 + $0x390] sm:$0xff] %v1433_v46  ;;  %v1127_v54 = vmul.f32 0.75, %v2453_v25  ;;  %v1143_v41 = vmul.f32 0.25, %v1071_v35  ;;  %v1097_v30 = vadd.f32 %v2436_v9, %v1081_v10  ;;  %v1113_v38 = vadd.f32 %v1105_v0, %v2436_v9 }
 0x14a   : > { %1183 = vst [vmem:[%s2115_s13 + $0xa0] sm:$0xff] %v1175_v21  ;;  %1685 = vst [vmem:[%s2115_s13 + $0x180] sm:$0xff] %v1191_v16  ;;  %v1137_v14 = vadd.f32 %v1129_v31, %v2439_v36  ;;  %v1153_v50 = vadd.f32 %v1145_v34, %v1129_v31  ;;  %v1095_v15 = vadd.f32 %v2457_v43, %v1079_v45 }
 0x14b   : > { %1693 = vst [vmem:[%s2115_s13 + $0x280] sm:$0xff] %v1223_v55  ;;  %1701 = vst [vmem:[%s2115_s13 + $0x380] sm:$0xff] %v1240_v8  ;;  %v1111_v6 = vadd.f32 %v1103_v63, %v2457_v43  ;;  %v1135_v42 = vadd.f32 %v1127_v54, %v2459_v61  ;;  %v1151_v57 = vadd.f32 %v1143_v41, %v1127_v54  ;;  %v1186_v62 = vmul.f32 0.25, %v1097_v30 }
 0x14c   : > { %1474 = vst [vmem:[%s2115_s13 + $0xb8] sm:$0xff] %v1466_v24  ;;  %1757 = vst [vmem:[%s2115_s13 + $0x198] sm:$0xff] %v1482_v5  ;;  %v1218_v28 = vmul.f32 0.75, %v1097_v30  ;;  %v1285_v25 = vmul.f32 0.25, %v1113_v38  ;;  %v1316_v1 = vmul.f32 0.75, %v1113_v38  ;;  %v1381_v27 = vmul.f32 0.25, %v1137_v14 }
 0x14d   : > { %1765 = vst [vmem:[%s2115_s13 + $0x298] sm:$0xff] %v1513_v13  ;;  %1773 = vst [vmem:[%s2115_s13 + $0x398] sm:$0xff] %v1529_v59  ;;  %v1412_v9 = vmul.f32 0.75, %v1137_v14  ;;  %v1477_v49 = vmul.f32 0.25, %v1153_v50  ;;  %v1508_v36 = vmul.f32 0.75, %v1153_v50  ;;  %v1194_v58 = vadd.f32 %v1186_v62, %v2731_v3 }
 0x14e   : > { %v1226_v43 = vadd.f32 %v1218_v28, %v2734_v11  ;;  %v1243_v61 = vadd.f32 %v1218_v28, %v1186_v62  ;;  %v1293_v46 = vadd.f32 %v1285_v25, %v2725_v12  ;;  %v1324_v39 = vadd.f32 %v1316_v1, %v2728_v56 }
 0x14f   : > { %v1340_v47 = vadd.f32 %v1316_v1, %v1285_v25  ;;  %v1389_v21 = vadd.f32 %v1381_v27, %v2259_v17  ;;  %v1420_v16 = vadd.f32 %v1412_v9, %v2261_v44  ;;  %1688 = vst [vmem:[%s2115_s13 + $0x1e0] sm:$0xff] %v1194_v58  ;;  %v1436_v3 = vadd.f32 %v1412_v9, %v1381_v27 }
 0x150   : > { %1696 = vst [vmem:[%s2115_s13 + $0x2e0] sm:$0xff] %v1226_v43  ;;  %1704 = vst [vmem:[%s2115_s13 + $0x3e0] sm:$0xff] %v1243_v61  ;;  %v1485_v11 = vadd.f32 %v1477_v49, %v2735_v53  ;;  %v1516_v12 = vadd.f32 %v1508_v36, %v2738_v26  ;;  %v1532_v55 = vadd.f32 %v1508_v36, %v1477_v49  ;;  %v1160_v17 = vmul.f32 0.25, %v1095_v15 }
 0x151   : > { %1712 = vst [vmem:[%s2115_s13 + $0x1e8] sm:$0xff] %v1293_v46  ;;  %1720 = vst [vmem:[%s2115_s13 + $0x2e8] sm:$0xff] %v1324_v39  ;;  %v1216_v44 = vmul.f32 0.75, %v1095_v15  ;;  %v1259_v56 = vmul.f32 0.25, %v1111_v6  ;;  %v1314_v8 = vmul.f32 0.75, %v1111_v6  ;;  %v1355_v53 = vmul.f32 0.25, %v1135_v42 }
 0x152   : > { %1728 = vst [vmem:[%s2115_s13 + $0x3e8] sm:$0xff] %v1340_v47  ;;  %1736 = vst [vmem:[%s2115_s13 + $0x1f0] sm:$0xff] %v1389_v21  ;;  %v1410_v51 = vmul.f32 0.75, %v1135_v42  ;;  %v1451_v26 = vmul.f32 0.25, %v1151_v57  ;;  %v1506_v35 = vmul.f32 0.75, %v1151_v57  ;;  %v1176_v24 = vadd.f32 %v2732_v22, %v1160_v17 }
 0x153   : > { %1744 = vst [vmem:[%s2115_s13 + $0x2f0] sm:$0xff] %v1420_v16  ;;  %1752 = vst [vmem:[%s2115_s13 + $0x3f0] sm:$0xff] %v1436_v3  ;;  %v1192_v5 = vadd.f32 %v2743_v52, %v1160_v17  ;;  %v1224_v13 = vadd.f32 %v1216_v44, %v2744_v7  ;;  %v1241_v59 = vadd.f32 %v1216_v44, %v2733_v32 }
 0x154   : > { %1760 = vst [vmem:[%s2115_s13 + $0x1f8] sm:$0xff] %v1485_v11  ;;  %1768 = vst [vmem:[%s2115_s13 + $0x2f8] sm:$0xff] %v1516_v12  ;;  %v1275_v10 = vadd.f32 %v2726_v60, %v1259_v56  ;;  %v1291_v0 = vadd.f32 %v2739_v4, %v1259_v56  ;;  %v1322_v31 = vadd.f32 %v1314_v8, %v2740_v23 }
 0x155   : > { %1776 = vst [vmem:[%s2115_s13 + $0x3f8] sm:$0xff] %v1532_v55  ;;  %v1338_v34 = vadd.f32 %v1314_v8, %v2727_v29  ;;  %1184 = vst [vmem:[%s2115_s13 + $0xc0] sm:$0xff] %v1176_v24  ;;  %v1371_v22 = vadd.f32 %v2729_v40, %v1355_v53  ;;  %v1387_v32 = vadd.f32 %v2741_v20, %v1355_v53 }
 0x156   : > { %1686 = vst [vmem:[%s2115_s13 + $0x1a0] sm:$0xff] %v1192_v5  ;;  %1694 = vst [vmem:[%s2115_s13 + $0x2a0] sm:$0xff] %v1224_v13  ;;  %v1418_v60 = vadd.f32 %v1410_v51, %v2742_v37  ;;  %v1434_v4 = vadd.f32 %v1410_v51, %v2730_v48  ;;  %v1467_v29 = vadd.f32 %v2736_v18, %v1451_v26 }
 0x157   : > { %1702 = vst [vmem:[%s2115_s13 + $0x3a0] sm:$0xff] %v1241_v59  ;;  %1283 = vst [vmem:[%s2115_s13 + $0xc8] sm:$0xff] %v1275_v10  ;;  %v1483_v23 = vadd.f32 %v2745_v19, %v1451_v26  ;;  %v1514_v40 = vadd.f32 %v1506_v35, %v2746_v2  ;;  %v1530_v52 = vadd.f32 %v1506_v35, %v2737_v33 }
 0x158   : > { %1710 = vst [vmem:[%s2115_s13 + $0x1a8] sm:$0xff] %v1291_v0  ;;  %1718 = vst [vmem:[%s2115_s13 + $0x2a8] sm:$0xff] %v1322_v31 }
 0x159   : > { %1726 = vst [vmem:[%s2115_s13 + $0x3a8] sm:$0xff] %v1338_v34  ;;  %1379 = vst [vmem:[%s2115_s13 + $0xd0] sm:$0xff] %v1371_v22 }
 0x15a   : > { %1734 = vst [vmem:[%s2115_s13 + $0x1b0] sm:$0xff] %v1387_v32  ;;  %1742 = vst [vmem:[%s2115_s13 + $0x2b0] sm:$0xff] %v1418_v60 }
 0x15b   : > { %1750 = vst [vmem:[%s2115_s13 + $0x3b0] sm:$0xff] %v1434_v4  ;;  %1475 = vst [vmem:[%s2115_s13 + $0xd8] sm:$0xff] %v1467_v29 }
 0x15c   : > { %1758 = vst [vmem:[%s2115_s13 + $0x1b8] sm:$0xff] %v1483_v23  ;;  %1766 = vst [vmem:[%s2115_s13 + $0x2b8] sm:$0xff] %v1514_v40 }
 0x15d   : > { %1774 = vst [vmem:[%s2115_s13 + $0x3b8] sm:$0xff] %v1530_v52 }
 0x15e PF: > { %s13_s12 = sadd.s32 1, %s1883_s12  }
 0x15f   : > { %p10_p4 = scmp.ge.s32.totalorder %s13_s12, 4  }
 0x161   :  { %12 = sbr.rel (!%p10_p4) target bundleno = 1 (0x1), region = 72 }

</bundles_post_ra>
